<compile_context>
chip_gen: v7x
topology: tpu7x:2x2x1
jax: 0.10.0
libtpu: 0.0.40
codegen_flags: <defaults>
</compile_context>

<pallas_src>
import functools

import numpy as np
import jax
import jax.numpy as jnp
from jax.experimental import pallas as pl
from jax.experimental.pallas import tpu as pltpu


# ----------------------------------------------------------------------------
# Generation-aware VMEM budget (v7x has only 64 MiB per TensorCore).
# ----------------------------------------------------------------------------
def _default_vmem_limit():
    try:
        cap = int(pltpu.get_tpu_info().vmem_capacity_bytes)
    except Exception:
        cap = 64 * 1024 * 1024
    return int(min(cap * 3 // 4, 96 * 1024 * 1024))


_VMEM_LIMIT = _default_vmem_limit()
_M_TILE = 1024         # rows per matmul / pooling tile
_HW_TILE = 1024        # spatial rows per fused SE/add tile
_PACK_LANES = 128      # packed output lanes per grouped-conv super-group


def _cparams(sem):
    return pltpu.CompilerParams(dimension_semantics=sem, vmem_limit_bytes=_VMEM_LIMIT)


# ----------------------------------------------------------------------------
# Pallas kernels
# ----------------------------------------------------------------------------
def _gmm_kernel(a_ref, w_ref, scale_ref, shift_ref, o_ref, *, act):
    # a_ref: (tm, K) bf16, w_ref: (1, K, N) bf16, scale/shift: (1, N) f32, o_ref: (tm, N)
    y = jnp.dot(a_ref[...], w_ref[0], preferred_element_type=jnp.float32)
    y = y * scale_ref[...] + shift_ref[...]
    if act:
        y = jnp.maximum(y, 0.0)
    o_ref[...] = y.astype(o_ref.dtype)


@functools.partial(jax.jit, static_argnames=("act", "out_dtype"))
def gmm_bn_act(a, w, scale, shift, *, act, out_dtype=jnp.bfloat16):
    """(Super-)grouped matmul + folded-BN affine + optional ReLU.

    a:     (M, G*K)  bf16, per-group K slabs contiguous along the last axis.
    w:     (G, K, N) bf16 (block-diagonal packed for grouped convs).
    scale: (1, G*N)  f32 ; shift: (1, G*N) f32.
    out:   (M, G*N)  out_dtype, channels already in natural order.
    Dense matmul is the G == 1 special case.
    """
    M, GK = a.shape
    G, K, N = w.shape
    assert GK == G * K
    tm = M if M <= _M_TILE else _M_TILE
    grid = (G, pl.cdiv(M, tm))          # group outer (weight stays resident), M-tile inner
    kernel = functools.partial(_gmm_kernel, act=act)
    return pl.pallas_call(
        kernel,
        out_shape=jax.ShapeDtypeStruct((M, G * N), out_dtype),
        grid=grid,
        in_specs=[
            pl.BlockSpec((tm, K), lambda g, m: (m, g)),
            pl.BlockSpec((1, K, N), lambda g, m: (g, 0, 0)),
            pl.BlockSpec((1, N), lambda g, m: (0, g)),
            pl.BlockSpec((1, N), lambda g, m: (0, g)),
        ],
        out_specs=pl.BlockSpec((tm, N), lambda g, m: (m, g)),
        compiler_params=_cparams(("parallel", "parallel")),
    )(a, w, scale, shift)


def _se_gate_kernel(x_ref, w1_ref, b1_ref, w2_ref, b2_ref, g_ref):
    # x_ref: (1, HW, C) bf16 -> gate (1, 1, C) f32: pool -> fc1+ReLU -> fc2 -> sigmoid.
    x = x_ref[0].astype(jnp.float32)
    pooled = jnp.mean(x, axis=0, keepdims=True)                        # (1, C)
    s = jnp.dot(pooled, w1_ref[...], preferred_element_type=jnp.float32) + b1_ref[...]
    s = jnp.maximum(s, 0.0)
    g = jnp.dot(s, w2_ref[...], preferred_element_type=jnp.float32) + b2_ref[...]
    g_ref[0] = 1.0 / (1.0 + jnp.exp(-g))


@jax.jit
def se_gate(x, w1, b1, w2, b2):
    """x: (N, HW, C) bf16 -> channel gates (N, 1, C) f32."""
    N, HW, C = x.shape
    R = w1.shape[1]
    return pl.pallas_call(
        _se_gate_kernel,
        out_shape=jax.ShapeDtypeStruct((N, 1, C), jnp.float32),
        grid=(N,),
        in_specs=[
            pl.BlockSpec((1, HW, C), lambda n: (n, 0, 0)),
            pl.BlockSpec((C, R), lambda n: (0, 0)),
            pl.BlockSpec((1, R), lambda n: (0, 0)),
            pl.BlockSpec((R, C), lambda n: (0, 0)),
            pl.BlockSpec((1, C), lambda n: (0, 0)),
        ],
        out_specs=pl.BlockSpec((1, 1, C), lambda n: (n, 0, 0)),
        compiler_params=_cparams(("parallel",)),
    )(x, w1, b1, w2, b2)


def _se_scale_add_relu_kernel(x_ref, g_ref, s_ref, o_ref):
    # fused SE channel scale + residual add + ReLU (f32 math, bf16 storage)
    x = x_ref[...].astype(jnp.float32)
    s = s_ref[...].astype(jnp.float32)
    o_ref[...] = jnp.maximum(x * g_ref[...] + s, 0.0).astype(o_ref.dtype)


@jax.jit
def se_scale_add_relu(x, gate, shortcut):
    """x, shortcut: (N, HW, C) bf16, gate: (N, 1, C) f32 -> relu(x*gate + shortcut) bf16."""
    N, HW, C = x.shape
    thw = HW if HW <= _HW_TILE else _HW_TILE
    return pl.pallas_call(
        _se_scale_add_relu_kernel,
        out_shape=jax.ShapeDtypeStruct((N, HW, C), jnp.bfloat16),
        grid=(N, pl.cdiv(HW, thw)),
        in_specs=[
            pl.BlockSpec((1, thw, C), lambda n, m: (n, m, 0)),
            pl.BlockSpec((1, 1, C), lambda n, m: (n, 0, 0)),
            pl.BlockSpec((1, thw, C), lambda n, m: (n, m, 0)),
        ],
        out_specs=pl.BlockSpec((1, thw, C), lambda n, m: (n, m, 0)),
        compiler_params=_cparams(("parallel", "parallel")),
    )(x, gate, shortcut)


def _max_kernel(p_ref, o_ref):
    o_ref[...] = jnp.max(p_ref[...], axis=0)


@jax.jit
def maxpool_3x3_s2_p1(x):
    """PyTorch MaxPool2d(3, stride=2, padding=1) in NHWC (pads with -inf), M-tiled."""
    N, H, W, C = x.shape
    Ho = (H + 2 - 3) // 2 + 1
    Wo = (W + 2 - 3) // 2 + 1
    xp = jnp.pad(x, ((0, 0), (1, 1), (1, 1), (0, 0)), constant_values=-np.inf)
    cols = [xp[:, i:i + 2 * Ho:2, j:j + 2 * Wo:2, :] for i in range(3) for j in range(3)]
    stacked = jnp.stack(cols, axis=0).reshape(9, N * Ho * Wo, C)
    M = N * Ho * Wo
    tm = M if M <= _M_TILE else _M_TILE
    out = pl.pallas_call(
        _max_kernel,
        out_shape=jax.ShapeDtypeStruct((M, C), x.dtype),
        grid=(pl.cdiv(M, tm),),
        in_specs=[pl.BlockSpec((9, tm, C), lambda m: (0, m, 0))],
        out_specs=pl.BlockSpec((tm, C), lambda m: (m, 0)),
        compiler_params=_cparams(("parallel",)),
    )(stacked)
    return out.reshape(N, Ho, Wo, C)


# ----------------------------------------------------------------------------
# JAX glue: im2col + conv wrapper
# ----------------------------------------------------------------------------
def _im2col(x, kh, kw, stride, pad):
    """x: (N,H,W,C) -> patches (N,Ho,Wo,C,kh*kw)  (K-order: channel outer, tap inner)."""
    N, H, W, C = x.shape
    Ho = (H + 2 * pad - kh) // stride + 1
    Wo = (W + 2 * pad - kw) // stride + 1
    xp = jnp.pad(x, ((0, 0), (pad, pad), (pad, pad), (0, 0)))
    cols = []
    for i in range(kh):
        for j in range(kw):
            cols.append(xp[:, i:i + stride * Ho:stride, j:j + stride * Wo:stride, :])
    p = jnp.stack(cols, axis=-1)  # (N, Ho, Wo, C, kh*kw)
    return p, Ho, Wo


def conv_bn_act(x, cp, *, stride=1, pad=0, act=True, out_dtype=jnp.bfloat16):
    """PyTorch-semantics Conv2d (bias=False) + folded BN + optional ReLU.

    x: (N,H,W,C) NHWC.  cp holds the matmul-ready (packed, bf16) weight and BN affine.
    """
    k = cp["k"]
    Nb = x.shape[0]
    xb = x.astype(jnp.bfloat16)
    if k == 1:
        if stride > 1:
            xb = xb[:, ::stride, ::stride, :]
        _, Ho, Wo, C = xb.shape
        A = xb.reshape(Nb * Ho * Wo, C)
    else:
        p, Ho, Wo = _im2col(xb, k, k, stride, pad)
        A = p.reshape(Nb * Ho * Wo, -1)        # (M, C*k*k), channel-outer / tap-inner
    out = gmm_bn_act(A, cp["wm"], cp["scale"], cp["shift"], act=act, out_dtype=out_dtype)
    Cout = cp["scale"].shape[1]
    return out.reshape(Nb, Ho, Wo, Cout)


# ----------------------------------------------------------------------------
# Model definition (gluon_seresnext101_32x4d): [3, 4, 23, 3], cardinality 32, width 4
# ----------------------------------------------------------------------------
_CARDINALITY = 32
_BASE_WIDTH = 4
_EXPANSION = 4
_STAGES = [(64, 3, 1), (128, 4, 2), (256, 23, 2), (512, 3, 2)]  # (planes, blocks, stride)


def make_params(key):
    keys = iter(jax.random.split(key, 4096))

    def nk():
        return next(keys)

    def conv_bn(cin, cout, k, groups=1):
        fan_in = (cin // groups) * k * k
        w = jax.random.normal(nk(), (cout, cin // groups, k, k), jnp.float32) * np.sqrt(2.0 / fan_in)
        gamma = 1.0 + 0.1 * jax.random.normal(nk(), (cout,), jnp.float32)
        beta = 0.1 * jax.random.normal(nk(), (cout,), jnp.float32)
        mean = 0.1 * jax.random.normal(nk(), (cout,), jnp.float32)
        var = jnp.abs(1.0 + 0.1 * jax.random.normal(nk(), (cout,), jnp.float32))
        scale = gamma / jnp.sqrt(var + 1e-5)
        shift = beta - mean * scale
        if groups == 1:
            # Dense conv: weight as (1, Cin*k*k, Cout), K channel-outer / tap-inner.
            wm = w.reshape(cout, cin * k * k).T[None]
        else:
            # Grouped conv: pack Gc = 128//opg groups per 128-lane super-group with a
            # block-diagonal weight -> one lane-dense MXU matmul per super-group.
            G = groups
            opg = cout // G
            cpg = cin // G
            Kg = cpg * k * k
            L = min(_PACK_LANES, cout)
            Gc = max(1, L // opg)
            SG = G // Gc
            assert Gc * opg == L and SG * Gc == G
            wg = w.reshape(G, opg, Kg).transpose(0, 2, 1)         # (G, Kg, opg)
            wg = wg.reshape(SG, Gc, Kg, opg)
            eye = jnp.eye(Gc, dtype=wg.dtype)
            wbd = wg[:, :, :, None, :] * eye[:, None, :, None]    # (SG, Gc, Kg, Gc, opg)
            wm = wbd.reshape(SG, Gc * Kg, Gc * opg)               # (SG, L*k*k, L)
        return {
            "wm": wm.astype(jnp.bfloat16),
            "scale": scale.reshape(1, cout),
            "shift": shift.reshape(1, cout),
            "k": k,
        }

    def make_se(c):
        r = c // 16
        return {
            "w1": jax.random.normal(nk(), (c, r), jnp.float32) * np.sqrt(2.0 / c),
            "b1": 0.01 * jax.random.normal(nk(), (1, r), jnp.float32),
            "w2": jax.random.normal(nk(), (r, c), jnp.float32) * np.sqrt(2.0 / r),
            "b2": 0.01 * jax.random.normal(nk(), (1, c), jnp.float32),
        }

    params = {"stem": conv_bn(3, 64, 7), "layers": []}
    inplanes = 64
    for planes, nblocks, stride in _STAGES:
        width = (planes * _BASE_WIDTH // 64) * _CARDINALITY
        outplanes = planes * _EXPANSION
        blocks = []
        for b in range(nblocks):
            s = stride if b == 0 else 1
            ds = conv_bn(inplanes, outplanes, 1) if (s != 1 or inplanes != outplanes) else None
            blocks.append({
                "conv1": conv_bn(inplanes, width, 1),
                "conv2": conv_bn(width, width, 3, groups=_CARDINALITY),
                "conv3": conv_bn(width, outplanes, 1),
                "se": make_se(outplanes),
                "downsample": ds,
                "stride": s,
            })
            inplanes = outplanes
        params["layers"].append(blocks)
    return params


def bottleneck(x, p):
    shortcut = x                                                    # bf16 NHWC
    out = conv_bn_act(x, p["conv1"], stride=1, pad=0, act=True, out_dtype=jnp.bfloat16)
    out = conv_bn_act(out, p["conv2"], stride=p["stride"], pad=1, act=True,
                      out_dtype=jnp.bfloat16)
    out = conv_bn_act(out, p["conv3"], stride=1, pad=0, act=False, out_dtype=jnp.bfloat16)
    Nb, H, W, C = out.shape
    se = p["se"]
    out_flat = out.reshape(Nb, H * W, C)
    gate = se_gate(out_flat, se["w1"], se["b1"], se["w2"], se["b2"])       # (N, 1, C) f32
    if p["downsample"] is not None:
        shortcut = conv_bn_act(shortcut, p["downsample"], stride=p["stride"], pad=0,
                               act=False, out_dtype=jnp.bfloat16)
    else:
        shortcut = shortcut.astype(jnp.bfloat16)
    y = se_scale_add_relu(out_flat, gate, shortcut.reshape(Nb, H * W, C))
    return y.reshape(Nb, H, W, C)


def forward_features(x_nchw, params):
    """Equivalent of `timm.create_model('gluon_seresnext101_32x4d').forward_features(x)`."""
    x = jnp.transpose(x_nchw, (0, 2, 3, 1)).astype(jnp.float32)  # NCHW -> NHWC
    x = conv_bn_act(x, params["stem"], stride=2, pad=3, act=True, out_dtype=jnp.bfloat16)
    x = maxpool_3x3_s2_p1(x)
    for stage in params["layers"]:
        for blk in stage:
            x = bottleneck(x, blk)
    # back to NCHW, (N, 2048, H/32, W/32), f32 like the PyTorch module
    return jnp.transpose(x, (0, 3, 1, 2)).astype(jnp.float32)


if __name__ == "__main__":
    key = jax.random.PRNGKey(0)
    pkey, xkey = jax.random.split(key)
    params = make_params(pkey)
    x = jax.random.normal(xkey, (2, 3, 64, 64), jnp.float32)  # NCHW, like PyTorch

    out = forward_features(x, params)
    out = jax.block_until_ready(out)

    assert out.shape == (2, 2048, 2, 2), out.shape
    assert bool(jnp.all(jnp.isfinite(out)))
    print("KERNEL_OK")
</pallas_src>

<mosaic_0001>
module attributes {stable_mosaic.version = 11 : i64} {
  func.func @_gmm_kernel(%arg0: i32, %arg1: i32, %arg2: memref<1024x147xbf16, #tpu.memory_space<vmem>>, %arg3: memref<1x147x64xbf16, #tpu.memory_space<vmem>>, %arg4: memref<1x64xf32, #tpu.memory_space<vmem>>, %arg5: memref<1x64xf32, #tpu.memory_space<vmem>>, %arg6: memref<1024x64xbf16, #tpu.memory_space<vmem>>) attributes {dimension_semantics = [#tpu.dimension_semantics<parallel>, #tpu.dimension_semantics<parallel>], iteration_bounds = array<i64: 1, 2>, scalar_prefetch = 0 : i64, scratch_operands = 0 : i64, tpu.core_type = #tpu.core_type<tc>, window_params = [{transform_indices = @transform_0, window_bounds = array<i64: 1024, 147>}, {transform_indices = @transform_1, window_bounds = array<i64: 1, 147, 64>}, {transform_indices = @transform_2, window_bounds = array<i64: 1, 64>}, {transform_indices = @transform_3, window_bounds = array<i64: 1, 64>}, {transform_indices = @transform_4, window_bounds = array<i64: 1024, 64>}]} {
    %c0 = arith.constant 0 : index
    %c0_0 = arith.constant 0 : index
    %0 = vector.load %arg2[%c0, %c0_0] : memref<1024x147xbf16, #tpu.memory_space<vmem>>, vector<1024x147xbf16>
    %c0_1 = arith.constant 0 : index
    %c0_2 = arith.constant 0 : index
    %c0_3 = arith.constant 0 : index
    %1 = vector.load %arg3[%c0_1, %c0_2, %c0_3] : memref<1x147x64xbf16, #tpu.memory_space<vmem>>, vector<1x147x64xbf16>
    %2 = vector.shape_cast %1 : vector<1x147x64xbf16> to vector<147x64xbf16>
    %cst = arith.constant dense<0.000000e+00> : vector<1024x64xf32>
    %3 = tpu.matmul %0, %2, %cst {dimension_numbers = #tpu.dot_dimension_numbers<[1], [0], [0], [1], [0, 0, 1, 1], [], []>} : vector<1024x147xbf16>, vector<147x64xbf16>, vector<1024x64xf32> -> vector<1024x64xf32>
    %c0_4 = arith.constant 0 : index
    %c0_5 = arith.constant 0 : index
    %4 = vector.load %arg4[%c0_4, %c0_5] : memref<1x64xf32, #tpu.memory_space<vmem>>, vector<1x64xf32>
    %5 = vector.broadcast %4 : vector<1x64xf32> to vector<1024x64xf32>
    %6 = arith.mulf %3, %5 : vector<1024x64xf32>
    %c0_6 = arith.constant 0 : index
    %c0_7 = arith.constant 0 : index
    %7 = vector.load %arg5[%c0_6, %c0_7] : memref<1x64xf32, #tpu.memory_space<vmem>>, vector<1x64xf32>
    %8 = vector.broadcast %7 : vector<1x64xf32> to vector<1024x64xf32>
    %9 = arith.addf %6, %8 : vector<1024x64xf32>
    %cst_8 = arith.constant 0.000000e+00 : f32
    %10 = vector.broadcast %cst_8 : f32 to vector<1024x64xf32>
    %11 = arith.maximumf %9, %10 : vector<1024x64xf32>
    %12 = arith.truncf %11 : vector<1024x64xf32> to vector<1024x64xbf16>
    %c0_9 = arith.constant 0 : index
    %c0_10 = arith.constant 0 : index
    %13 = vector.load %arg6[%c0_9, %c0_10] : memref<1024x64xbf16, #tpu.memory_space<vmem>>, vector<1024x64xbf16>
    tpu.vector_store %arg6[%c0_9, %c0_10], %12 {strides = array<i32>} : memref<1024x64xbf16, #tpu.memory_space<vmem>>, vector<1024x64xbf16>,
    return
  }
  func.func @transform_0(%arg0: i32, %arg1: i32) -> (i32, i32) {
    %c0_i32 = arith.constant 0 : i32
    return %arg1, %arg0 : i32, i32
  }
  func.func @transform_1(%arg0: i32, %arg1: i32) -> (i32, i32, i32) {
    %c0_i32 = arith.constant 0 : i32
    %c0_i32_0 = arith.constant 0 : i32
    %c0_i32_1 = arith.constant 0 : i32
    return %arg0, %c0_i32, %c0_i32_0 : i32, i32, i32
  }
  func.func @transform_2(%arg0: i32, %arg1: i32) -> (i32, i32) {
    %c0_i32 = arith.constant 0 : i32
    %c0_i32_0 = arith.constant 0 : i32
    return %c0_i32, %arg0 : i32, i32
  }
  func.func @transform_3(%arg0: i32, %arg1: i32) -> (i32, i32) {
    %c0_i32 = arith.constant 0 : i32
    %c0_i32_0 = arith.constant 0 : i32
    return %c0_i32, %arg0 : i32, i32
  }
  func.func @transform_4(%arg0: i32, %arg1: i32) -> (i32, i32) {
    %c0_i32 = arith.constant 0 : i32
    return %arg1, %arg0 : i32, i32
  }
}

</mosaic_0001>

<bundles_post_ra>
// kernel: gmm_bn_act.1
= control target key start
LH: loop header
LB: loop body
LE: loop exit
PB: predicated region body
PF: predicated region fallthrough
CT: control target
= control target key end

     0   :  { %s3750_s15 = smov 0   ;;  %s3752_s16 = smov 0   ;;  %s4545_s0 = inlined_call_operand.vmem [shape: bf16[2048,147], index: 0, kind: input, shape index: {}]   ;;  %s4546_s1 = inlined_call_operand.vmem [shape: bf16[1,147,64], index: 1, kind: input, shape index: {}]   ;;  %s4547_s2 = inlined_call_operand.vmem [shape: f32[1,64], index: 2, kind: input, shape index: {}]   ;;  %s4548_s3 = inlined_call_operand.vmem [shape: f32[1,64], index: 3, kind: input, shape index: {}]   ;;  %s4549_s4 = inlined_call_operand.vmem [shape: bf16[2048,64], index: 4, kind: output, shape index: {}]  }
   0x1   :  { %s3754_s17 = smov 0  }
   0x2 LB: > { %s23_s18 = sadd.s32 1, %s3717_s16  ;;  %p2980_p0 = scmp.ge.s32.totalorder %s3721_s17, 1  ;;  %s3721_s17 = sphi %s3754_s17, %s14_s17   ;;  %s3717_s16 = sphi %s3752_s16, %s4551_s16   ;;  %s3713_s15 = sphi %s3750_s15, %s4550_s15  }
   0x3   : > { %p24_p1 = scmp.ge.s32.totalorder %s23_s18, 2  ;;  %p211_p2 = scmp.lt.s32.totalorder %s3721_s17, 3 }
   0x5   : > { %s4553_s18 = smov (%p24_p1, %s23_s18), 0  ;;  %p212_p3 = pnand %p2980_p0, %p211_p2 }
   0x6   : > { %v3495_v0 = vld [vmem:[%s4546_s1] sm:$0xff] (!%p212_p3)   ;;  %v3723_v1 = vmov (!%p212_p3), 0   ;;  %v3496_v2 = vld [vmem:[%s4546_s1 + $0x8] sm:$0xff] (!%p212_p3)   ;;  %v3497_v3 = vld [vmem:[%s4546_s1 + $0x10] sm:$0xff] (!%p212_p3)   ;;  %s2981_s25 = sshll.u32 (!%p212_p3), %s3713_s15, 7  ;;  %vm1069_vm0 = vcmask (!%p212_p3), 154624  }
   0x7   : > { %215 = sbr.rel (%p212_p3) target bundleno = 518 (0x206), region = 36  ;;  %1269 = vmatprep.subr.bf16.mxu0 (!%p212_p3), %v3723_v1  ;;  %3449 = vmatprep.subr.bf16.mxu1 (!%p212_p3), %v3723_v1  ;;  %p258_p4 = scmp.lt.s32.totalorder (!%p212_p3), %s2981_s25, 255  ;;  %v3498_v4 = vld [vmem:[%s4546_s1 + $0x18] sm:$0xff] (!%p212_p3)   ;;  %v3499_v5 = vld [vmem:[%s4546_s1 + $0x20] sm:$0xff] (!%p212_p3)   ;;  %v3500_v8 = vld [vmem:[%s4546_s1 + $0x28] sm:$0xff] (!%p212_p3)   ;;  %vm1262_vm1 = vcmask (!%p212_p3), 1040384  }
   0x8   : > { %1270 = vmatpush1.bf16.msra.mxu0 (!%p212_p3), %v3495_v0  ;;  %3459 = vmatpush1.bf16.msra.mxu1 (!%p212_p3), %v3495_v0  ;;  %v3501_v9 = vld [vmem:[%s4546_s1 + $0x30] sm:$0xff] (!%p212_p3)   ;;  %v3502_v10 = vld [vmem:[%s4546_s1 + $0x38] sm:$0xff] (!%p212_p3)   ;;  %vm1263_vm2 = vcmask (!%p212_p3), 1041408   ;;  %v3724_v11 = vmov (!%p212_p3), 65535   ;;  %v3503_v13 = vld [vmem:[%s4546_s1 + $0x40] sm:$0xff] (!%p212_p3)   ;;  %vm2724_vm3 = vcmask (!%p212_p3), 519168  }
   0x9   : > { %1271 = vmatprep.subr.bf16.mxu0 (!%p212_p3), %v3723_v1  ;;  %3450 = vmatprep.subr.bf16.mxu1 (!%p212_p3), %v3723_v1  ;;  %v1264_v12 = vsel (!%p212_p3), %vm1262_vm1, 4294967295, %v3724_v11  ;;  %v3504_v14 = vld [vmem:[%s4546_s1 + $0x48] ss:$0 sps:$4 sm:$0x33] (!%p212_p3)  }
   0xa   : > { %v1265_v15 = vsel (!%p212_p3), %vm1263_vm2, %v1264_v12, 0 }
   0xb   : > { %v1267_v16 = vand.u32 (!%p212_p3), %v3504_v14, %v1265_v15 }
   0xc   : > { %1272 = vmatpush1.bf16.msra.mxu0 (!%p212_p3), %v3496_v2  ;;  %3460 = vmatpush1.bf16.msra.mxu1 (!%p212_p3), %v3496_v2 }
   0xd   : > { %1273 = vmatprep.subr.bf16.mxu0 (!%p212_p3), %v3723_v1  ;;  %3451 = vmatprep.subr.bf16.mxu1 (!%p212_p3), %v3723_v1 }
   0xe   : > { %s4555_s25 = smov (!%p258_p4, %s2981_s25), 255 }
   0xf   : > { %s3320_s28 = sshll.u32 %s4555_s25, 3  ;;  %s2985_s26 = sshll.u32 %s4555_s25, 2 }
  0x10   : > { %1274 = vmatpush1.bf16.msra.mxu0 %v3497_v3  ;;  %3461 = vmatpush1.bf16.msra.mxu1 %v3497_v3  ;;  %s3786_s5 = scalar_lea.vmem %s4545_s0, %s3320_s28  ;;  %s3998_s28 = scalar_lea.vmem %s4549_s4, %s2985_s26 }
  0x11   : > { %1275 = vmatprep.subr.bf16.mxu0 %v3723_v1  ;;  %3452 = vmatprep.subr.bf16.mxu1 %v3723_v1  ;;  %v3507_v6 = vld [vmem:[%s3786_s5 + $0x4] ss:$8 sps:$4 sm:$0xff]   ;;  %v3505_v17 = vld [vmem:[%s3786_s5] ss:$8 sps:$4 sm:$0xff]   ;;  %v3511_v19 = vld [vmem:[%s3786_s5 + $0x14] ss:$8 sps:$4 sm:$0xff]  }
  0x12   : > { %v3510_v7 = vld [vmem:[%s3786_s5 + $0x204] ss:$8 sps:$4 sm:$0xff]   ;;  %3124 = vmatprep.mubr.msk.bf16.mxu0 %vm1069_vm0, %v3507_v6  ;;  %v3508_v18 = vld [vmem:[%s3786_s5 + $0x200] ss:$8 sps:$4 sm:$0xff]   ;;  %v3513_v20 = vld [vmem:[%s3786_s5 + $0x214] ss:$8 sps:$4 sm:$0xff]  }
  0x13   : > { %3156 = vmatprep.mubr.msk.bf16.mxu1 %vm1069_vm0, %v3510_v7  ;;  %v3515_v21 = vld [vmem:[%s3786_s5 + $0x10] ss:$8 sps:$4 sm:$0xff]   ;;  %v3517_v23 = vld [vmem:[%s3786_s5 + $0x24] ss:$8 sps:$4 sm:$0xff]   ;;  %v3521_v25 = vld [vmem:[%s3786_s5 + $0x20] ss:$8 sps:$4 sm:$0xff]  }
  0x14   : > { %1276 = vmatpush1.bf16.msra.mxu0 %v3498_v4  ;;  %3462 = vmatpush1.bf16.msra.mxu1 %v3498_v4  ;;  %v3516_v22 = vld [vmem:[%s3786_s5 + $0x210] ss:$8 sps:$4 sm:$0xff]   ;;  %v3519_v24 = vld [vmem:[%s3786_s5 + $0x224] ss:$8 sps:$4 sm:$0xff]   ;;  %v3522_v26 = vld [vmem:[%s3786_s5 + $0x220] ss:$8 sps:$4 sm:$0xff]  }
  0x15   : > { %1277 = vmatprep.subr.bf16.mxu0 %v3723_v1  ;;  %3453 = vmatprep.subr.bf16.mxu1 %v3723_v1  ;;  %v3523_v27 = vld [vmem:[%s3786_s5 + $0x34] ss:$8 sps:$4 sm:$0xff]   ;;  %v3527_v29 = vld [vmem:[%s3786_s5 + $0x30] ss:$8 sps:$4 sm:$0xff]   ;;  %v3529_v31 = vld [vmem:[%s3786_s5 + $0x44] ss:$8 sps:$4 sm:$0xff]  }
  0x16   : > { %v3525_v28 = vld [vmem:[%s3786_s5 + $0x234] ss:$8 sps:$4 sm:$0xff]   ;;  %v3528_v30 = vld [vmem:[%s3786_s5 + $0x230] ss:$8 sps:$4 sm:$0xff]   ;;  %v3531_v32 = vld [vmem:[%s3786_s5 + $0x244] ss:$8 sps:$4 sm:$0xff]  }
  0x17   : > { %v3533_v33 = vld [vmem:[%s3786_s5 + $0x40] ss:$8 sps:$4 sm:$0xff]   ;;  %v3535_v35 = vld [vmem:[%s3786_s5 + $0x54] ss:$8 sps:$4 sm:$0xff]   ;;  %v3539_v37 = vld [vmem:[%s3786_s5 + $0x50] ss:$8 sps:$4 sm:$0xff]  }
  0x18   : > { %1278 = vmatpush1.bf16.msra.mxu0 %v3499_v5  ;;  %3463 = vmatpush1.bf16.msra.mxu1 %v3499_v5  ;;  %v3534_v34 = vld [vmem:[%s3786_s5 + $0x240] ss:$8 sps:$4 sm:$0xff]   ;;  %v3537_v36 = vld [vmem:[%s3786_s5 + $0x254] ss:$8 sps:$4 sm:$0xff]   ;;  %v3540_v38 = vld [vmem:[%s3786_s5 + $0x250] ss:$8 sps:$4 sm:$0xff]  }
  0x19   : > { %1279 = vmatprep.subr.bf16.mxu0 %v3723_v1  ;;  %3454 = vmatprep.subr.bf16.mxu1 %v3723_v1  ;;  %v3541_v39 = vld [vmem:[%s3786_s5 + $0x64] ss:$8 sps:$4 sm:$0xff]   ;;  %v3545_v41 = vld [vmem:[%s3786_s5 + $0x60] ss:$8 sps:$4 sm:$0xff]   ;;  %v3547_v43 = vld [vmem:[%s3786_s5 + $0x74] ss:$8 sps:$4 sm:$0xff]  }
  0x1a   : > { %v3543_v40 = vld [vmem:[%s3786_s5 + $0x264] ss:$8 sps:$4 sm:$0xff]   ;;  %v3546_v42 = vld [vmem:[%s3786_s5 + $0x260] ss:$8 sps:$4 sm:$0xff]   ;;  %v3549_v44 = vld [vmem:[%s3786_s5 + $0x274] ss:$8 sps:$4 sm:$0xff]  }
  0x1b   : > { %v3551_v45 = vld [vmem:[%s3786_s5 + $0x70] ss:$8 sps:$4 sm:$0xff]   ;;  %v3553_v47 = vld [vmem:[%s3786_s5 + $0x84] ss:$8 sps:$4 sm:$0xff]   ;;  %v3557_v49 = vld [vmem:[%s3786_s5 + $0x80] ss:$8 sps:$4 sm:$0xff]  }
  0x1c   : > { %1280 = vmatpush1.bf16.msra.mxu0 %v3500_v8  ;;  %3464 = vmatpush1.bf16.msra.mxu1 %v3500_v8  ;;  %v3552_v46 = vld [vmem:[%s3786_s5 + $0x270] ss:$8 sps:$4 sm:$0xff]   ;;  %v3555_v48 = vld [vmem:[%s3786_s5 + $0x284] ss:$8 sps:$4 sm:$0xff]   ;;  %v3558_v50 = vld [vmem:[%s3786_s5 + $0x280] ss:$8 sps:$4 sm:$0xff]  }
  0x1d   : > { %1281 = vmatprep.subr.bf16.mxu0 %v3723_v1  ;;  %3455 = vmatprep.subr.bf16.mxu1 %v3723_v1  ;;  %v3559_v51 = vld [vmem:[%s3786_s5 + $0x94] ss:$8 sps:$4 sm:$0xff]   ;;  %v3563_v53 = vld [vmem:[%s3786_s5 + $0x90] ss:$8 sps:$4 sm:$0xff]   ;;  %v3565_v55 = vld [vmem:[%s3786_s5 + $0xa4] ss:$8 sps:$4 sm:$0xff]  }
  0x1e   : > { %v3561_v52 = vld [vmem:[%s3786_s5 + $0x294] ss:$8 sps:$4 sm:$0xff]   ;;  %v3564_v54 = vld [vmem:[%s3786_s5 + $0x290] ss:$8 sps:$4 sm:$0xff]   ;;  %v3567_v56 = vld [vmem:[%s3786_s5 + $0x2a4] ss:$8 sps:$4 sm:$0xff]  }
  0x1f   : > { %v3569_v57 = vld [vmem:[%s3786_s5 + $0xa0] ss:$8 sps:$4 sm:$0xff]   ;;  %v3571_v59 = vld [vmem:[%s3786_s5 + $0xb4] ss:$8 sps:$4 sm:$0xff]   ;;  %v3575_v61 = vld [vmem:[%s3786_s5 + $0xb0] ss:$8 sps:$4 sm:$0xff]  }
  0x20   : > { %1282 = vmatpush1.bf16.msra.mxu0 %v3501_v9  ;;  %3465 = vmatpush1.bf16.msra.mxu1 %v3501_v9  ;;  %v3570_v58 = vld [vmem:[%s3786_s5 + $0x2a0] ss:$8 sps:$4 sm:$0xff]   ;;  %v3573_v60 = vld [vmem:[%s3786_s5 + $0x2b4] ss:$8 sps:$4 sm:$0xff]   ;;  %v3576_v62 = vld [vmem:[%s3786_s5 + $0x2b0] ss:$8 sps:$4 sm:$0xff]  }
  0x21   : > { %1283 = vmatprep.subr.bf16.mxu0 %v3723_v1  ;;  %3456 = vmatprep.subr.bf16.mxu1 %v3723_v1  ;;  %v3577_v63 = vld [vmem:[%s3786_s5 + $0xc4] ss:$8 sps:$4 sm:$0xff]   ;;  %v3582_v2 = vld [vmem:[%s3786_s5 + $0x2c0] ss:$8 sps:$4 sm:$0xff]   ;;  %v3583_v3 = vld [vmem:[%s3786_s5 + $0xd4] ss:$8 sps:$4 sm:$0xff]  }
  0x22   : > { %v3579_v0 = vld [vmem:[%s3786_s5 + $0x2c4] ss:$8 sps:$4 sm:$0xff]   ;;  %v3585_v4 = vld [vmem:[%s3786_s5 + $0x2d4] ss:$8 sps:$4 sm:$0xff]   ;;  %v3587_v5 = vld [vmem:[%s3786_s5 + $0xd0] ss:$8 sps:$4 sm:$0xff]  }
  0x23   : > { %v3588_v6 = vld [vmem:[%s3786_s5 + $0x2d0] ss:$8 sps:$4 sm:$0xff]   ;;  %v3589_v7 = vld [vmem:[%s3786_s5 + $0xe4] ss:$8 sps:$4 sm:$0xff]   ;;  %v3593_v9 = vld [vmem:[%s3786_s5 + $0xe0] ss:$8 sps:$4 sm:$0xff]  }
  0x24   : > { %1284 = vmatpush1.bf16.msra.mxu0 %v3502_v10  ;;  %3466 = vmatpush1.bf16.msra.mxu1 %v3502_v10  ;;  %v3591_v8 = vld [vmem:[%s3786_s5 + $0x2e4] ss:$8 sps:$4 sm:$0xff]   ;;  %v3594_v10 = vld [vmem:[%s3786_s5 + $0x2e0] ss:$8 sps:$4 sm:$0xff]   ;;  %v3595_v11 = vld [vmem:[%s3786_s5 + $0xf4] ss:$8 sps:$4 sm:$0xff]  }
  0x25   : > { %1285 = vmatprep.subr.bf16.mxu0 %v3723_v1  ;;  %3457 = vmatprep.subr.bf16.mxu1 %v3723_v1  ;;  %v3597_v12 = vld [vmem:[%s3786_s5 + $0x2f4] ss:$8 sps:$4 sm:$0xff]   ;;  %v3600_v14 = vld [vmem:[%s3786_s5 + $0x2f0] ss:$8 sps:$4 sm:$0xff]   ;;  %v3601_v15 = vld [vmem:[%s3786_s5 + $0x104] ss:$8 sps:$4 sm:$0xff]  }
  0x28   : > { %1286 = vmatpush1.bf16.msra.mxu0 %v3503_v13  ;;  %3467 = vmatpush1.bf16.msra.mxu1 %v3503_v13  ;;  %v3599_v13 = vld [vmem:[%s3786_s5 + $0xf0] ss:$8 sps:$4 sm:$0xff]  }
  0x29   : > { %1287 = vmatprep.subr.bf16.mxu0 %v3723_v1  ;;  %3458 = vmatprep.subr.bf16.mxu1 %v3723_v1  ;;  %v3581_v1 = vld [vmem:[%s3786_s5 + $0xc0] ss:$8 sps:$4 sm:$0xff]  }
  0x2c   : > { %1288 = vmatpush1.bf16.msra.mxu0 %v1267_v16  ;;  %3468 = vmatpush1.bf16.msra.mxu1 %v1267_v16  ;;  %v3603_v16 = vld [vmem:[%s3786_s5 + $0x304] ss:$8 sps:$4 sm:$0xff]  }
  0x2f   : > { %1302 = vmatmul.mubr.bf16.vlgmr.msra.gmra.mrb[0].mxu0 %v3505_v17  ;;  %1558 = vmatmul.mubr.bf16.vlgmr.msra.gmra.mrb[0].mxu1 %v3508_v18  ;;  %v3605_v17 = vld [vmem:[%s3786_s5 + $0x100] ss:$8 sps:$4 sm:$0xff]  }
  0x30   : > { %3125 = vmatprep.mubr.msk.bf16.mxu0 %vm1069_vm0, %v3511_v19  ;;  %3157 = vmatprep.mubr.msk.bf16.mxu1 %vm1069_vm0, %v3513_v20  ;;  %v3606_v18 = vld [vmem:[%s3786_s5 + $0x300] ss:$8 sps:$4 sm:$0xff]   ;;  %v3607_v19 = vld [vmem:[%s3786_s5 + $0x114] ss:$8 sps:$4 sm:$0xff]  }
  0x31   : > { %v3609_v20 = vld [vmem:[%s3786_s5 + $0x314] ss:$8 sps:$4 sm:$0xff]  }
  0x37   : > { %1310 = vmatmul.mubr.bf16.gmra.mrb[4].mxu0 %v3515_v21  ;;  %1566 = vmatmul.mubr.bf16.gmra.mrb[4].mxu1 %v3516_v22  ;;  %v3611_v21 = vld [vmem:[%s3786_s5 + $0x110] ss:$8 sps:$4 sm:$0xff]  }
  0x38   : > { %3126 = vmatprep.mubr.msk.bf16.mxu0 %vm1069_vm0, %v3517_v23  ;;  %3158 = vmatprep.mubr.msk.bf16.mxu1 %vm1069_vm0, %v3519_v24  ;;  %v3612_v22 = vld [vmem:[%s3786_s5 + $0x310] ss:$8 sps:$4 sm:$0xff]   ;;  %v3613_v23 = vld [vmem:[%s3786_s5 + $0x124] ss:$8 sps:$4 sm:$0xff]  }
  0x39   : > { %v3615_v24 = vld [vmem:[%s3786_s5 + $0x324] ss:$8 sps:$4 sm:$0xff]  }
  0x3f   : > { %1318 = vmatmul.mubr.bf16.gmra.mrb[8].mxu0 %v3521_v25  ;;  %1574 = vmatmul.mubr.bf16.gmra.mrb[8].mxu1 %v3522_v26  ;;  %v3617_v25 = vld [vmem:[%s3786_s5 + $0x120] ss:$8 sps:$4 sm:$0xff]  }
  0x40   : > { %3127 = vmatprep.mubr.msk.bf16.mxu0 %vm1069_vm0, %v3523_v27  ;;  %3159 = vmatprep.mubr.msk.bf16.mxu1 %vm1069_vm0, %v3525_v28  ;;  %v3618_v26 = vld [vmem:[%s3786_s5 + $0x320] ss:$8 sps:$4 sm:$0xff]   ;;  %v3619_v27 = vld [vmem:[%s3786_s5 + $0x134] ss:$8 sps:$4 sm:$0xff]  }
  0x41   : > { %v3621_v28 = vld [vmem:[%s3786_s5 + $0x334] ss:$8 sps:$4 sm:$0xff]  }
  0x47   : > { %1326 = vmatmul.mubr.bf16.gmra.mrb[12].mxu0 %v3527_v29  ;;  %1582 = vmatmul.mubr.bf16.gmra.mrb[12].mxu1 %v3528_v30  ;;  %v3623_v29 = vld [vmem:[%s3786_s5 + $0x130] ss:$8 sps:$4 sm:$0xff]  }
  0x48   : > { %3128 = vmatprep.mubr.msk.bf16.mxu0 %vm1069_vm0, %v3529_v31  ;;  %3160 = vmatprep.mubr.msk.bf16.mxu1 %vm1069_vm0, %v3531_v32  ;;  %v3624_v30 = vld [vmem:[%s3786_s5 + $0x330] ss:$8 sps:$4 sm:$0xff]   ;;  %v3625_v31 = vld [vmem:[%s3786_s5 + $0x144] ss:$8 sps:$4 sm:$0xff]  }
  0x49   : > { %v3627_v32 = vld [vmem:[%s3786_s5 + $0x344] ss:$8 sps:$4 sm:$0xff]  }
  0x4f   : > { %1334 = vmatmul.mubr.bf16.gmra.mrb[16].mxu0 %v3533_v33  ;;  %1590 = vmatmul.mubr.bf16.gmra.mrb[16].mxu1 %v3534_v34  ;;  %v3629_v33 = vld [vmem:[%s3786_s5 + $0x140] ss:$8 sps:$4 sm:$0xff]  }
  0x50   : > { %3129 = vmatprep.mubr.msk.bf16.mxu0 %vm1069_vm0, %v3535_v35  ;;  %3161 = vmatprep.mubr.msk.bf16.mxu1 %vm1069_vm0, %v3537_v36  ;;  %v3630_v34 = vld [vmem:[%s3786_s5 + $0x340] ss:$8 sps:$4 sm:$0xff]   ;;  %v3631_v35 = vld [vmem:[%s3786_s5 + $0x154] ss:$8 sps:$4 sm:$0xff]  }
  0x51   : > { %v3633_v36 = vld [vmem:[%s3786_s5 + $0x354] ss:$8 sps:$4 sm:$0xff]  }
  0x57   : > { %1342 = vmatmul.mubr.bf16.gmra.mrb[20].mxu0 %v3539_v37  ;;  %1598 = vmatmul.mubr.bf16.gmra.mrb[20].mxu1 %v3540_v38  ;;  %v3635_v37 = vld [vmem:[%s3786_s5 + $0x150] ss:$8 sps:$4 sm:$0xff]  }
  0x58   : > { %3130 = vmatprep.mubr.msk.bf16.mxu0 %vm1069_vm0, %v3541_v39  ;;  %3162 = vmatprep.mubr.msk.bf16.mxu1 %vm1069_vm0, %v3543_v40  ;;  %v3636_v38 = vld [vmem:[%s3786_s5 + $0x350] ss:$8 sps:$4 sm:$0xff]   ;;  %v3637_v39 = vld [vmem:[%s3786_s5 + $0x164] ss:$8 sps:$4 sm:$0xff]  }
  0x59   : > { %v3639_v40 = vld [vmem:[%s3786_s5 + $0x364] ss:$8 sps:$4 sm:$0xff]  }
  0x5f   : > { %1350 = vmatmul.mubr.bf16.gmra.mrb[24].mxu0 %v3545_v41  ;;  %1606 = vmatmul.mubr.bf16.gmra.mrb[24].mxu1 %v3546_v42  ;;  %v3641_v41 = vld [vmem:[%s3786_s5 + $0x160] ss:$8 sps:$4 sm:$0xff]  }
  0x60   : > { %3131 = vmatprep.mubr.msk.bf16.mxu0 %vm1069_vm0, %v3547_v43  ;;  %3163 = vmatprep.mubr.msk.bf16.mxu1 %vm1069_vm0, %v3549_v44  ;;  %v3642_v42 = vld [vmem:[%s3786_s5 + $0x360] ss:$8 sps:$4 sm:$0xff]   ;;  %v3643_v43 = vld [vmem:[%s3786_s5 + $0x174] ss:$8 sps:$4 sm:$0xff]  }
  0x61   : > { %v3645_v44 = vld [vmem:[%s3786_s5 + $0x374] ss:$8 sps:$4 sm:$0xff]  }
  0x67   : > { %1358 = vmatmul.mubr.bf16.gmra.mrb[28].mxu0 %v3551_v45  ;;  %1614 = vmatmul.mubr.bf16.gmra.mrb[28].mxu1 %v3552_v46  ;;  %v3647_v45 = vld [vmem:[%s3786_s5 + $0x170] ss:$8 sps:$4 sm:$0xff]  }
  0x68   : > { %3132 = vmatprep.mubr.msk.bf16.mxu0 %vm1069_vm0, %v3553_v47  ;;  %3164 = vmatprep.mubr.msk.bf16.mxu1 %vm1069_vm0, %v3555_v48  ;;  %v3648_v46 = vld [vmem:[%s3786_s5 + $0x370] ss:$8 sps:$4 sm:$0xff]   ;;  %v3649_v47 = vld [vmem:[%s3786_s5 + $0x184] ss:$8 sps:$4 sm:$0xff]  }
  0x69   : > { %v3651_v48 = vld [vmem:[%s3786_s5 + $0x384] ss:$8 sps:$4 sm:$0xff]  }
  0x6f   : > { %1366 = vmatmul.mubr.bf16.gmra.mrb[32].mxu0 %v3557_v49  ;;  %1622 = vmatmul.mubr.bf16.gmra.mrb[32].mxu1 %v3558_v50  ;;  %v3653_v49 = vld [vmem:[%s3786_s5 + $0x180] ss:$8 sps:$4 sm:$0xff]  }
  0x70   : > { %3133 = vmatprep.mubr.msk.bf16.mxu0 %vm1069_vm0, %v3559_v51  ;;  %3165 = vmatprep.mubr.msk.bf16.mxu1 %vm1069_vm0, %v3561_v52  ;;  %v3654_v50 = vld [vmem:[%s3786_s5 + $0x380] ss:$8 sps:$4 sm:$0xff]   ;;  %v3655_v51 = vld [vmem:[%s3786_s5 + $0x194] ss:$8 sps:$4 sm:$0xff]  }
  0x71   : > { %v3657_v52 = vld [vmem:[%s3786_s5 + $0x394] ss:$8 sps:$4 sm:$0xff]  }
  0x77   : > { %1374 = vmatmul.mubr.bf16.gmra.mrb[36].mxu0 %v3563_v53  ;;  %1630 = vmatmul.mubr.bf16.gmra.mrb[36].mxu1 %v3564_v54  ;;  %v3659_v53 = vld [vmem:[%s3786_s5 + $0x190] ss:$8 sps:$4 sm:$0xff]  }
  0x78   : > { %3134 = vmatprep.mubr.msk.bf16.mxu0 %vm1069_vm0, %v3565_v55  ;;  %3166 = vmatprep.mubr.msk.bf16.mxu1 %vm1069_vm0, %v3567_v56  ;;  %v3660_v54 = vld [vmem:[%s3786_s5 + $0x390] ss:$8 sps:$4 sm:$0xff]   ;;  %v3661_v55 = vld [vmem:[%s3786_s5 + $0x1a4] ss:$8 sps:$4 sm:$0xff]  }
  0x79   : > { %v3663_v56 = vld [vmem:[%s3786_s5 + $0x3a4] ss:$8 sps:$4 sm:$0xff]  }
  0x7f   : > { %1382 = vmatmul.mubr.bf16.gmra.mrb[40].mxu0 %v3569_v57  ;;  %1638 = vmatmul.mubr.bf16.gmra.mrb[40].mxu1 %v3570_v58  ;;  %v3665_v57 = vld [vmem:[%s3786_s5 + $0x1a0] ss:$8 sps:$4 sm:$0xff]  }
  0x80   : > { %3135 = vmatprep.mubr.msk.bf16.mxu0 %vm1069_vm0, %v3571_v59  ;;  %3167 = vmatprep.mubr.msk.bf16.mxu1 %vm1069_vm0, %v3573_v60  ;;  %v3666_v58 = vld [vmem:[%s3786_s5 + $0x3a0] ss:$8 sps:$4 sm:$0xff]   ;;  %v3667_v59 = vld [vmem:[%s3786_s5 + $0x1b4] ss:$8 sps:$4 sm:$0xff]  }
  0x81   : > { %v3669_v60 = vld [vmem:[%s3786_s5 + $0x3b4] ss:$8 sps:$4 sm:$0xff]  }
  0x87   : > { %1390 = vmatmul.mubr.bf16.gmra.mrb[44].mxu0 %v3575_v61  ;;  %1646 = vmatmul.mubr.bf16.gmra.mrb[44].mxu1 %v3576_v62  ;;  %v3973_v61 = vld [vmem:[%s4547_s2] ss:$0 sm:$0xff] }
  0x88   : > { %3136 = vmatprep.mubr.msk.bf16.mxu0 %vm1069_vm0, %v3577_v63  ;;  %3168 = vmatprep.mubr.msk.bf16.mxu1 %vm1069_vm0, %v3579_v0  ;;  %v3980_v63 = vld [vmem:[%s4548_s3] ss:$0 sm:$0xff] }
  0x8f   : > { %1398 = vmatmul.mubr.bf16.gmra.mrb[48].mxu0 %v3581_v1  ;;  %1654 = vmatmul.mubr.bf16.gmra.mrb[48].mxu1 %v3582_v2 }
  0x90   : > { %3137 = vmatprep.mubr.msk.bf16.mxu0 %vm1069_vm0, %v3583_v3  ;;  %3169 = vmatprep.mubr.msk.bf16.mxu1 %vm1069_vm0, %v3585_v4 }
  0x97   : > { %1406 = vmatmul.mubr.bf16.gmra.mrb[52].mxu0 %v3587_v5  ;;  %1662 = vmatmul.mubr.bf16.gmra.mrb[52].mxu1 %v3588_v6  ;;  %v3671_v5 = vld [vmem:[%s3786_s5 + $0x1b0] ss:$8 sps:$4 sm:$0xff]  }
  0x98   : > { %3138 = vmatprep.mubr.msk.bf16.mxu0 %vm1069_vm0, %v3589_v7  ;;  %3170 = vmatprep.mubr.msk.bf16.mxu1 %vm1069_vm0, %v3591_v8  ;;  %v3672_v6 = vld [vmem:[%s3786_s5 + $0x3b0] ss:$8 sps:$4 sm:$0xff]  }
  0x9f   : > { %1414 = vmatmul.mubr.bf16.gmra.mrb[56].mxu0 %v3593_v9  ;;  %1670 = vmatmul.mubr.bf16.gmra.mrb[56].mxu1 %v3594_v10  ;;  %v3673_v9 = vld [vmem:[%s3786_s5 + $0x1c4] ss:$8 sps:$4 sm:$0xff]  }
  0xa0   : > { %3139 = vmatprep.mubr.msk.bf16.mxu0 %vm1069_vm0, %v3595_v11  ;;  %3171 = vmatprep.mubr.msk.bf16.mxu1 %vm1069_vm0, %v3597_v12  ;;  %v3675_v10 = vld [vmem:[%s3786_s5 + $0x3c4] ss:$8 sps:$4 sm:$0xff]  }
  0xa7   : > { %1422 = vmatmul.mubr.bf16.gmra.mrb[60].mxu0 %v3599_v13  ;;  %1678 = vmatmul.mubr.bf16.gmra.mrb[60].mxu1 %v3600_v14 }
  0xa8   : > { %3140 = vmatprep.mubr.msk.bf16.mxu0 %vm1069_vm0, %v3601_v15  ;;  %3172 = vmatprep.mubr.msk.bf16.mxu1 %vm1069_vm0, %v3603_v16 }
  0xaf   : > { %1430 = vmatmul.mubr.bf16.gmra.mrb[64].mxu0 %v3605_v17  ;;  %1686 = vmatmul.mubr.bf16.gmra.mrb[64].mxu1 %v3606_v18 }
  0xb0   : > { %3141 = vmatprep.mubr.msk.bf16.mxu0 %vm1069_vm0, %v3607_v19  ;;  %3173 = vmatprep.mubr.msk.bf16.mxu1 %vm1069_vm0, %v3609_v20 }
  0xb7   : > { %1438 = vmatmul.mubr.bf16.gmra.mrb[68].mxu0 %v3611_v21  ;;  %1694 = vmatmul.mubr.bf16.gmra.mrb[68].mxu1 %v3612_v22 }
  0xb8   : > { %3142 = vmatprep.mubr.msk.bf16.mxu0 %vm1069_vm0, %v3613_v23  ;;  %3174 = vmatprep.mubr.msk.bf16.mxu1 %vm1069_vm0, %v3615_v24 }
  0xbf   : > { %1446 = vmatmul.mubr.bf16.gmra.mrb[72].mxu0 %v3617_v25  ;;  %1702 = vmatmul.mubr.bf16.gmra.mrb[72].mxu1 %v3618_v26 }
  0xc0   : > { %3143 = vmatprep.mubr.msk.bf16.mxu0 %vm1069_vm0, %v3619_v27  ;;  %3175 = vmatprep.mubr.msk.bf16.mxu1 %vm1069_vm0, %v3621_v28 }
  0xc7   : > { %1454 = vmatmul.mubr.bf16.gmra.mrb[76].mxu0 %v3623_v29  ;;  %1710 = vmatmul.mubr.bf16.gmra.mrb[76].mxu1 %v3624_v30 }
  0xc8   : > { %3144 = vmatprep.mubr.msk.bf16.mxu0 %vm1069_vm0, %v3625_v31  ;;  %3176 = vmatprep.mubr.msk.bf16.mxu1 %vm1069_vm0, %v3627_v32 }
  0xcf   : > { %1462 = vmatmul.mubr.bf16.gmra.mrb[80].mxu0 %v3629_v33  ;;  %1718 = vmatmul.mubr.bf16.gmra.mrb[80].mxu1 %v3630_v34  ;;  %v3677_v33 = vld [vmem:[%s3786_s5 + $0x1c0] ss:$8 sps:$4 sm:$0xff]  }
  0xd0   : > { %3145 = vmatprep.mubr.msk.bf16.mxu0 %vm1069_vm0, %v3631_v35  ;;  %3177 = vmatprep.mubr.msk.bf16.mxu1 %vm1069_vm0, %v3633_v36  ;;  %v3678_v34 = vld [vmem:[%s3786_s5 + $0x3c0] ss:$8 sps:$4 sm:$0xff]  }
  0xd7   : > { %1470 = vmatmul.mubr.bf16.gmra.mrb[84].mxu0 %v3635_v37  ;;  %1726 = vmatmul.mubr.bf16.gmra.mrb[84].mxu1 %v3636_v38  ;;  %v3679_v37 = vld [vmem:[%s3786_s5 + $0x1d4] ss:$8 sps:$4 sm:$0xff]  }
  0xd8   : > { %3146 = vmatprep.mubr.msk.bf16.mxu0 %vm1069_vm0, %v3637_v39  ;;  %3178 = vmatprep.mubr.msk.bf16.mxu1 %vm1069_vm0, %v3639_v40  ;;  %v3681_v38 = vld [vmem:[%s3786_s5 + $0x3d4] ss:$8 sps:$4 sm:$0xff]  }
  0xdf   : > { %1478 = vmatmul.mubr.bf16.gmra.mrb[88].mxu0 %v3641_v41  ;;  %1734 = vmatmul.mubr.bf16.gmra.mrb[88].mxu1 %v3642_v42 }
  0xe0   : > { %3147 = vmatprep.mubr.msk.bf16.mxu0 %vm1069_vm0, %v3643_v43  ;;  %3179 = vmatprep.mubr.msk.bf16.mxu1 %vm1069_vm0, %v3645_v44 }
  0xe7   : > { %1486 = vmatmul.mubr.bf16.gmra.mrb[92].mxu0 %v3647_v45  ;;  %1742 = vmatmul.mubr.bf16.gmra.mrb[92].mxu1 %v3648_v46 }
  0xe8   : > { %3148 = vmatprep.mubr.msk.bf16.mxu0 %vm1069_vm0, %v3649_v47  ;;  %3180 = vmatprep.mubr.msk.bf16.mxu1 %vm1069_vm0, %v3651_v48 }
  0xef   : > { %1494 = vmatmul.mubr.bf16.gmra.mrb[96].mxu0 %v3653_v49  ;;  %1750 = vmatmul.mubr.bf16.gmra.mrb[96].mxu1 %v3654_v50 }
  0xf0   : > { %3149 = vmatprep.mubr.msk.bf16.mxu0 %vm1069_vm0, %v3655_v51  ;;  %3181 = vmatprep.mubr.msk.bf16.mxu1 %vm1069_vm0, %v3657_v52 }
  0xf7   : > { %1502 = vmatmul.mubr.bf16.gmra.mrb[100].mxu0 %v3659_v53  ;;  %1758 = vmatmul.mubr.bf16.gmra.mrb[100].mxu1 %v3660_v54 }
  0xf8   : > { %3150 = vmatprep.mubr.msk.bf16.mxu0 %vm1069_vm0, %v3661_v55  ;;  %3182 = vmatprep.mubr.msk.bf16.mxu1 %vm1069_vm0, %v3663_v56 }
  0xff   : > { %1510 = vmatmul.mubr.bf16.gmra.mrb[104].mxu0 %v3665_v57  ;;  %1766 = vmatmul.mubr.bf16.gmra.mrb[104].mxu1 %v3666_v58 }
 0x100   : > { %3151 = vmatprep.mubr.msk.bf16.mxu0 %vm1069_vm0, %v3667_v59  ;;  %3183 = vmatprep.mubr.msk.bf16.mxu1 %vm1069_vm0, %v3669_v60 }
 0x102   : > { %v1303_v62 = vpop.f32.mrb[0].mxu0  ;;  %v1559_v0 = vpop.f32.mrb[0].mxu1 }
 0x103   : > { %v1821_v1 = vmul.f32 %v3973_v61, %v1303_v62  ;;  %v1885_v2 = vmul.f32 %v3973_v61, %v1559_v0  ;;  %v1305_v3 = vpop.f32.mrb[1].mxu0  ;;  %v1561_v4 = vpop.f32.mrb[1].mxu1  ;;  %v3683_v62 = vld [vmem:[%s3786_s5 + $0x1d0] ss:$8 sps:$4 sm:$0xff]  }
 0x104   : > { %v1306_v7 = vpop.f32.mrb[2].mxu0  ;;  %v1562_v8 = vpop.f32.mrb[2].mxu1  ;;  %v3684_v0 = vld [vmem:[%s3786_s5 + $0x3d0] ss:$8 sps:$4 sm:$0xff]   ;;  %v3685_v3 = vld [vmem:[%s3786_s5 + $0x1e4] ss:$8 sps:$4 sm:$0xff]  }
 0x105   : > { %v1956_v11 = vadd.f32 %v3980_v63, %v1821_v1  ;;  %v2020_v12 = vadd.f32 %v3980_v63, %v1885_v2  ;;  %v1822_v13 = vmul.f32 %v3973_v61, %v1306_v7  ;;  %v1886_v14 = vmul.f32 %v3973_v61, %v1562_v8  ;;  %v1308_v15 = vpop.f32.mrb[3].mxu0  ;;  %v1564_v16 = vpop.f32.mrb[3].mxu1  ;;  %v3687_v4 = vld [vmem:[%s3786_s5 + $0x3e4] ss:$8 sps:$4 sm:$0xff]  }
 0x107   : > { %v2084_v17 = vmax.f32 %v1956_v11, 0.0  ;;  %v2148_v18 = vmax.f32 %v2020_v12, 0.0  ;;  %v1957_v19 = vadd.f32 %v3980_v63, %v1822_v13  ;;  %v2021_v20 = vadd.f32 %v3980_v63, %v1886_v14  ;;  %1518 = vmatmul.mubr.bf16.gmra.mrb[108].mxu0 %v3671_v5  ;;  %1774 = vmatmul.mubr.bf16.gmra.mrb[108].mxu1 %v3672_v6 }
 0x108   : > { %3152 = vmatprep.mubr.msk.bf16.mxu0 %vm1069_vm0, %v3673_v9  ;;  %3184 = vmatprep.mubr.msk.bf16.mxu1 %vm1069_vm0, %v3675_v10 }
 0x109   : > { %v3321_v21 = vpack.c.bf16 %v2084_v17, %v2084_v17  ;;  %v3385_v22 = vpack.c.bf16 %v2148_v18, %v2148_v18  ;;  %v2085_v23 = vmax.f32 %v1957_v19, 0.0  ;;  %v2149_v24 = vmax.f32 %v2021_v20, 0.0 }
 0x10a   : > { %v1311_v25 = vpop.f32.mrb[4].mxu0  ;;  %v1567_v26 = vpop.f32.mrb[4].mxu1 }
 0x10b   : > { %2725 = vst.msk [vmem:[%s3998_s28] sm:$0xf] %vm2724_vm3, %v3321_v21  ;;  %2789 = vst.msk [vmem:[%s3998_s28 + $0x100] sm:$0xf] %vm2724_vm3, %v3385_v22  ;;  %v3322_v27 = vpack.c.bf16 %v2085_v23, %v2085_v23  ;;  %v3386_v28 = vpack.c.bf16 %v2149_v24, %v2149_v24  ;;  %v1823_v29 = vmul.f32 %v3973_v61, %v1311_v25  ;;  %v1313_v31 = vpop.f32.mrb[5].mxu0  ;;  %v1569_v32 = vpop.f32.mrb[5].mxu1 }
 0x10c   : > { %v1887_v30 = vmul.f32 %v3973_v61, %v1567_v26  ;;  %v1314_v35 = vpop.f32.mrb[6].mxu0  ;;  %v1570_v36 = vpop.f32.mrb[6].mxu1  ;;  %v3691_v31 = vld [vmem:[%s3786_s5 + $0x1f4] ss:$8 sps:$4 sm:$0xff]  }
 0x10d   : > { %2726 = vst.msk [vmem:[%s3998_s28 + $0x4] sm:$0xf] %vm2724_vm3, %v3322_v27  ;;  %2790 = vst.msk [vmem:[%s3998_s28 + $0x104] sm:$0xf] %vm2724_vm3, %v3386_v28  ;;  %v1958_v39 = vadd.f32 %v3980_v63, %v1823_v29  ;;  %v1824_v41 = vmul.f32 %v3973_v61, %v1314_v35  ;;  %v1888_v42 = vmul.f32 %v3973_v61, %v1570_v36  ;;  %v1316_v43 = vpop.f32.mrb[7].mxu0  ;;  %v1572_v44 = vpop.f32.mrb[7].mxu1 }
 0x10e   : > { %v2022_v40 = vadd.f32 %v3980_v63, %v1887_v30  ;;  %v3689_v27 = vld [vmem:[%s3786_s5 + $0x1e0] ss:$8 sps:$4 sm:$0xff]   ;;  %v3693_v32 = vld [vmem:[%s3786_s5 + $0x3f4] ss:$8 sps:$4 sm:$0xff]  }
 0x10f   : > { %v2086_v45 = vmax.f32 %v1958_v39, 0.0  ;;  %v1959_v47 = vadd.f32 %v3980_v63, %v1824_v41  ;;  %v2023_v48 = vadd.f32 %v3980_v63, %v1888_v42  ;;  %1526 = vmatmul.mubr.bf16.gmra.mrb[112].mxu0 %v3677_v33  ;;  %1782 = vmatmul.mubr.bf16.gmra.mrb[112].mxu1 %v3678_v34  ;;  %v3690_v28 = vld [vmem:[%s3786_s5 + $0x3e0] ss:$8 sps:$4 sm:$0xff]  }
 0x110   : > { %v2150_v46 = vmax.f32 %v2022_v40, 0.0  ;;  %3153 = vmatprep.mubr.msk.bf16.mxu0 %vm1069_vm0, %v3679_v37  ;;  %3185 = vmatprep.mubr.msk.bf16.mxu1 %vm1069_vm0, %v3681_v38 }
 0x111   : > { %v3323_v49 = vpack.c.bf16 %v2086_v45, %v2086_v45  ;;  %v2087_v51 = vmax.f32 %v1959_v47, 0.0  ;;  %v2151_v52 = vmax.f32 %v2023_v48, 0.0 }
 0x112   : > { %v3387_v50 = vpack.c.bf16 %v2150_v46, %v2150_v46  ;;  %v1319_v53 = vpop.f32.mrb[8].mxu0  ;;  %v1575_v54 = vpop.f32.mrb[8].mxu1 }
 0x113   : > { %2727 = vst.msk [vmem:[%s3998_s28 + $0x8] sm:$0xf] %vm2724_vm3, %v3323_v49  ;;  %v3324_v55 = vpack.c.bf16 %v2087_v51, %v2087_v51  ;;  %v3388_v56 = vpack.c.bf16 %v2151_v52, %v2151_v52  ;;  %v1825_v57 = vmul.f32 %v3973_v61, %v1319_v53  ;;  %v1889_v58 = vmul.f32 %v3973_v61, %v1575_v54  ;;  %v1321_v59 = vpop.f32.mrb[9].mxu0  ;;  %v1577_v60 = vpop.f32.mrb[9].mxu1 }
 0x114   : > { %2791 = vst.msk [vmem:[%s3998_s28 + $0x108] sm:$0xf] %vm2724_vm3, %v3387_v50  ;;  %v1322_v1 = vpop.f32.mrb[10].mxu0  ;;  %v1578_v2 = vpop.f32.mrb[10].mxu1 }
 0x115   : > { %2728 = vst.msk [vmem:[%s3998_s28 + $0xc] sm:$0xf] %vm2724_vm3, %v3324_v55  ;;  %2792 = vst.msk [vmem:[%s3998_s28 + $0x10c] sm:$0xf] %vm2724_vm3, %v3388_v56  ;;  %v1960_v5 = vadd.f32 %v3980_v63, %v1825_v57  ;;  %v2024_v6 = vadd.f32 %v3980_v63, %v1889_v58  ;;  %v1826_v7 = vmul.f32 %v3973_v61, %v1322_v1  ;;  %v1324_v9 = vpop.f32.mrb[11].mxu0  ;;  %v1580_v10 = vpop.f32.mrb[11].mxu1 }
 0x116   : > { %v1890_v8 = vmul.f32 %v3973_v61, %v1578_v2  ;;  %v3695_v55 = vld [vmem:[%s3786_s5 + $0x1f0] ss:$8 sps:$4 sm:$0xff]  }
 0x117   : > { %v2088_v11 = vmax.f32 %v1960_v5, 0.0  ;;  %v2152_v12 = vmax.f32 %v2024_v6, 0.0  ;;  %v1961_v13 = vadd.f32 %v3980_v63, %v1826_v7  ;;  %1534 = vmatmul.mubr.bf16.gmra.mrb[116].mxu0 %v3683_v62  ;;  %1790 = vmatmul.mubr.bf16.gmra.mrb[116].mxu1 %v3684_v0  ;;  %v3696_v56 = vld [vmem:[%s3786_s5 + $0x3f0] ss:$8 sps:$4 sm:$0xff]  }
 0x118   : > { %v2025_v14 = vadd.f32 %v3980_v63, %v1890_v8  ;;  %3154 = vmatprep.mubr.msk.bf16.mxu0 %vm1069_vm0, %v3685_v3  ;;  %3186 = vmatprep.mubr.msk.bf16.mxu1 %vm1069_vm0, %v3687_v4 }
 0x119   : > { %v3325_v15 = vpack.c.bf16 %v2088_v11, %v2088_v11  ;;  %v3389_v16 = vpack.c.bf16 %v2152_v12, %v2152_v12  ;;  %v2089_v17 = vmax.f32 %v1961_v13, 0.0 }
 0x11a   : > { %v2153_v18 = vmax.f32 %v2025_v14, 0.0  ;;  %v1327_v19 = vpop.f32.mrb[12].mxu0  ;;  %v1583_v20 = vpop.f32.mrb[12].mxu1 }
 0x11b   : > { %2729 = vst.msk [vmem:[%s3998_s28 + $0x10] sm:$0xf] %vm2724_vm3, %v3325_v15  ;;  %2793 = vst.msk [vmem:[%s3998_s28 + $0x110] sm:$0xf] %vm2724_vm3, %v3389_v16  ;;  %v3326_v21 = vpack.c.bf16 %v2089_v17, %v2089_v17  ;;  %v1827_v23 = vmul.f32 %v3973_v61, %v1327_v19  ;;  %v1891_v24 = vmul.f32 %v3973_v61, %v1583_v20  ;;  %v1329_v25 = vpop.f32.mrb[13].mxu0  ;;  %v1585_v26 = vpop.f32.mrb[13].mxu1 }
 0x11c   : > { %v3390_v22 = vpack.c.bf16 %v2153_v18, %v2153_v18  ;;  %v1330_v29 = vpop.f32.mrb[14].mxu0  ;;  %v1586_v30 = vpop.f32.mrb[14].mxu1 }
 0x11d   : > { %2730 = vst.msk [vmem:[%s3998_s28 + $0x14] sm:$0xf] %vm2724_vm3, %v3326_v21  ;;  %v1962_v33 = vadd.f32 %v3980_v63, %v1827_v23  ;;  %v2026_v34 = vadd.f32 %v3980_v63, %v1891_v24  ;;  %v1828_v35 = vmul.f32 %v3973_v61, %v1330_v29  ;;  %v1892_v36 = vmul.f32 %v3973_v61, %v1586_v30  ;;  %v1332_v37 = vpop.f32.mrb[15].mxu0  ;;  %v1588_v38 = vpop.f32.mrb[15].mxu1 }
 0x11e   : > { %2794 = vst.msk [vmem:[%s3998_s28 + $0x114] sm:$0xf] %vm2724_vm3, %v3390_v22 }
 0x11f   : > { %v2090_v39 = vmax.f32 %v1962_v33, 0.0  ;;  %v2154_v40 = vmax.f32 %v2026_v34, 0.0  ;;  %v1963_v41 = vadd.f32 %v3980_v63, %v1828_v35  ;;  %v2027_v42 = vadd.f32 %v3980_v63, %v1892_v36  ;;  %1542 = vmatmul.mubr.bf16.gmra.mrb[120].mxu0 %v3689_v27  ;;  %1798 = vmatmul.mubr.bf16.gmra.mrb[120].mxu1 %v3690_v28 }
 0x120   : > { %3155 = vmatprep.mubr.msk.bf16.mxu0 %vm1069_vm0, %v3691_v31  ;;  %3187 = vmatprep.mubr.msk.bf16.mxu1 %vm1069_vm0, %v3693_v32 }
 0x121   : > { %v3327_v43 = vpack.c.bf16 %v2090_v39, %v2090_v39  ;;  %v3391_v44 = vpack.c.bf16 %v2154_v40, %v2154_v40  ;;  %v2091_v45 = vmax.f32 %v1963_v41, 0.0  ;;  %v2155_v46 = vmax.f32 %v2027_v42, 0.0 }
 0x122   : > { %v1335_v47 = vpop.f32.mrb[16].mxu0  ;;  %v1591_v48 = vpop.f32.mrb[16].mxu1 }
 0x123   : > { %2731 = vst.msk [vmem:[%s3998_s28 + $0x18] sm:$0xf] %vm2724_vm3, %v3327_v43  ;;  %2795 = vst.msk [vmem:[%s3998_s28 + $0x118] sm:$0xf] %vm2724_vm3, %v3391_v44  ;;  %v3328_v49 = vpack.c.bf16 %v2091_v45, %v2091_v45  ;;  %v3392_v50 = vpack.c.bf16 %v2155_v46, %v2155_v46  ;;  %v1829_v51 = vmul.f32 %v3973_v61, %v1335_v47  ;;  %v1337_v53 = vpop.f32.mrb[17].mxu0  ;;  %v1593_v54 = vpop.f32.mrb[17].mxu1 }
 0x124   : > { %v1893_v52 = vmul.f32 %v3973_v61, %v1591_v48  ;;  %v1338_v57 = vpop.f32.mrb[18].mxu0  ;;  %v1594_v58 = vpop.f32.mrb[18].mxu1 }
 0x125   : > { %2732 = vst.msk [vmem:[%s3998_s28 + $0x1c] sm:$0xf] %vm2724_vm3, %v3328_v49  ;;  %2796 = vst.msk [vmem:[%s3998_s28 + $0x11c] sm:$0xf] %vm2724_vm3, %v3392_v50  ;;  %v1964_v59 = vadd.f32 %v3980_v63, %v1829_v51  ;;  %v1830_v62 = vmul.f32 %v3973_v61, %v1338_v57  ;;  %v1894_v0 = vmul.f32 %v3973_v61, %v1594_v58  ;;  %v1340_v1 = vpop.f32.mrb[19].mxu0  ;;  %v1596_v2 = vpop.f32.mrb[19].mxu1 }
 0x126   : > { %v2028_v60 = vadd.f32 %v3980_v63, %v1893_v52 }
 0x127   : > { %v2092_v3 = vmax.f32 %v1964_v59, 0.0  ;;  %v1965_v5 = vadd.f32 %v3980_v63, %v1830_v62  ;;  %v2029_v6 = vadd.f32 %v3980_v63, %v1894_v0  ;;  %1550 = vmatmul.mubr.bf16.gmra.mrb[124].mxu0 %v3695_v55  ;;  %1806 = vmatmul.mubr.bf16.gmra.mrb[124].mxu1 %v3696_v56 }
 0x128   : > { %v2156_v4 = vmax.f32 %v2028_v60, 0.0 }
 0x129   : > { %v3329_v7 = vpack.c.bf16 %v2092_v3, %v2092_v3  ;;  %v2093_v9 = vmax.f32 %v1965_v5, 0.0  ;;  %v2157_v10 = vmax.f32 %v2029_v6, 0.0 }
 0x12a   : > { %v3393_v8 = vpack.c.bf16 %v2156_v4, %v2156_v4  ;;  %v1343_v11 = vpop.f32.mrb[20].mxu0  ;;  %v1599_v12 = vpop.f32.mrb[20].mxu1 }
 0x12b   : > { %2733 = vst.msk [vmem:[%s3998_s28 + $0x20] sm:$0xf] %vm2724_vm3, %v3329_v7  ;;  %v3330_v13 = vpack.c.bf16 %v2093_v9, %v2093_v9  ;;  %v3394_v14 = vpack.c.bf16 %v2157_v10, %v2157_v10  ;;  %v1831_v15 = vmul.f32 %v3973_v61, %v1343_v11  ;;  %v1895_v16 = vmul.f32 %v3973_v61, %v1599_v12  ;;  %v1345_v17 = vpop.f32.mrb[21].mxu0  ;;  %v1601_v18 = vpop.f32.mrb[21].mxu1 }
 0x12c   : > { %2797 = vst.msk [vmem:[%s3998_s28 + $0x120] sm:$0xf] %vm2724_vm3, %v3393_v8  ;;  %v1346_v19 = vpop.f32.mrb[22].mxu0  ;;  %v1602_v20 = vpop.f32.mrb[22].mxu1 }
 0x12d   : > { %2734 = vst.msk [vmem:[%s3998_s28 + $0x24] sm:$0xf] %vm2724_vm3, %v3330_v13  ;;  %2798 = vst.msk [vmem:[%s3998_s28 + $0x124] sm:$0xf] %vm2724_vm3, %v3394_v14  ;;  %v1966_v21 = vadd.f32 %v3980_v63, %v1831_v15  ;;  %v2030_v22 = vadd.f32 %v3980_v63, %v1895_v16  ;;  %v1832_v23 = vmul.f32 %v3973_v61, %v1346_v19  ;;  %v1348_v25 = vpop.f32.mrb[23].mxu0  ;;  %v1604_v26 = vpop.f32.mrb[23].mxu1 }
 0x12e   : > { %v1896_v24 = vmul.f32 %v3973_v61, %v1602_v20 }
 0x12f   : > { %v2094_v27 = vmax.f32 %v1966_v21, 0.0  ;;  %v2158_v28 = vmax.f32 %v2030_v22, 0.0  ;;  %v1967_v29 = vadd.f32 %v3980_v63, %v1832_v23 }
 0x130   : > { %v2031_v30 = vadd.f32 %v3980_v63, %v1896_v24 }
 0x131   : > { %v3331_v31 = vpack.c.bf16 %v2094_v27, %v2094_v27  ;;  %v3395_v32 = vpack.c.bf16 %v2158_v28, %v2158_v28  ;;  %v2095_v33 = vmax.f32 %v1967_v29, 0.0 }
 0x132   : > { %v2159_v34 = vmax.f32 %v2031_v30, 0.0  ;;  %v1351_v35 = vpop.f32.mrb[24].mxu0  ;;  %v1607_v36 = vpop.f32.mrb[24].mxu1 }
 0x133   : > { %2735 = vst.msk [vmem:[%s3998_s28 + $0x28] sm:$0xf] %vm2724_vm3, %v3331_v31  ;;  %2799 = vst.msk [vmem:[%s3998_s28 + $0x128] sm:$0xf] %vm2724_vm3, %v3395_v32  ;;  %v3332_v37 = vpack.c.bf16 %v2095_v33, %v2095_v33  ;;  %v1833_v39 = vmul.f32 %v3973_v61, %v1351_v35  ;;  %v1897_v40 = vmul.f32 %v3973_v61, %v1607_v36  ;;  %v1353_v41 = vpop.f32.mrb[25].mxu0  ;;  %v1609_v42 = vpop.f32.mrb[25].mxu1 }
 0x134   : > { %v3396_v38 = vpack.c.bf16 %v2159_v34, %v2159_v34  ;;  %v1354_v43 = vpop.f32.mrb[26].mxu0  ;;  %v1610_v44 = vpop.f32.mrb[26].mxu1 }
 0x135   : > { %2736 = vst.msk [vmem:[%s3998_s28 + $0x2c] sm:$0xf] %vm2724_vm3, %v3332_v37  ;;  %v1968_v45 = vadd.f32 %v3980_v63, %v1833_v39  ;;  %v2032_v46 = vadd.f32 %v3980_v63, %v1897_v40  ;;  %v1834_v47 = vmul.f32 %v3973_v61, %v1354_v43  ;;  %v1898_v48 = vmul.f32 %v3973_v61, %v1610_v44  ;;  %v1356_v49 = vpop.f32.mrb[27].mxu0  ;;  %v1612_v50 = vpop.f32.mrb[27].mxu1 }
 0x136   : > { %2800 = vst.msk [vmem:[%s3998_s28 + $0x12c] sm:$0xf] %vm2724_vm3, %v3396_v38 }
 0x137   : > { %v2096_v51 = vmax.f32 %v1968_v45, 0.0  ;;  %v2160_v52 = vmax.f32 %v2032_v46, 0.0  ;;  %v1969_v53 = vadd.f32 %v3980_v63, %v1834_v47  ;;  %v2033_v54 = vadd.f32 %v3980_v63, %v1898_v48 }
 0x139   : > { %v3333_v55 = vpack.c.bf16 %v2096_v51, %v2096_v51  ;;  %v3397_v56 = vpack.c.bf16 %v2160_v52, %v2160_v52  ;;  %v2097_v57 = vmax.f32 %v1969_v53, 0.0  ;;  %v2161_v58 = vmax.f32 %v2033_v54, 0.0 }
 0x13a   : > { %v1359_v59 = vpop.f32.mrb[28].mxu0  ;;  %v1615_v60 = vpop.f32.mrb[28].mxu1 }
 0x13b   : > { %2737 = vst.msk [vmem:[%s3998_s28 + $0x30] sm:$0xf] %vm2724_vm3, %v3333_v55  ;;  %2801 = vst.msk [vmem:[%s3998_s28 + $0x130] sm:$0xf] %vm2724_vm3, %v3397_v56  ;;  %v3334_v62 = vpack.c.bf16 %v2097_v57, %v2097_v57  ;;  %v3398_v0 = vpack.c.bf16 %v2161_v58, %v2161_v58  ;;  %v1835_v1 = vmul.f32 %v3973_v61, %v1359_v59  ;;  %v1361_v3 = vpop.f32.mrb[29].mxu0  ;;  %v1617_v4 = vpop.f32.mrb[29].mxu1 }
 0x13c   : > { %v1899_v2 = vmul.f32 %v3973_v61, %v1615_v60  ;;  %v1362_v5 = vpop.f32.mrb[30].mxu0  ;;  %v1618_v6 = vpop.f32.mrb[30].mxu1 }
 0x13d   : > { %2738 = vst.msk [vmem:[%s3998_s28 + $0x34] sm:$0xf] %vm2724_vm3, %v3334_v62  ;;  %2802 = vst.msk [vmem:[%s3998_s28 + $0x134] sm:$0xf] %vm2724_vm3, %v3398_v0  ;;  %v1970_v7 = vadd.f32 %v3980_v63, %v1835_v1  ;;  %v1836_v9 = vmul.f32 %v3973_v61, %v1362_v5  ;;  %v1900_v10 = vmul.f32 %v3973_v61, %v1618_v6  ;;  %v1364_v11 = vpop.f32.mrb[31].mxu0  ;;  %v1620_v12 = vpop.f32.mrb[31].mxu1 }
 0x13e   : > { %v2034_v8 = vadd.f32 %v3980_v63, %v1899_v2 }
 0x13f   : > { %v2098_v13 = vmax.f32 %v1970_v7, 0.0  ;;  %v1971_v15 = vadd.f32 %v3980_v63, %v1836_v9  ;;  %v2035_v16 = vadd.f32 %v3980_v63, %v1900_v10 }
 0x140   : > { %v2162_v14 = vmax.f32 %v2034_v8, 0.0 }
 0x141   : > { %v3335_v17 = vpack.c.bf16 %v2098_v13, %v2098_v13  ;;  %v2099_v19 = vmax.f32 %v1971_v15, 0.0  ;;  %v2163_v20 = vmax.f32 %v2035_v16, 0.0 }
 0x142   : > { %v3399_v18 = vpack.c.bf16 %v2162_v14, %v2162_v14  ;;  %v1367_v21 = vpop.f32.mrb[32].mxu0  ;;  %v1623_v22 = vpop.f32.mrb[32].mxu1 }
 0x143   : > { %2739 = vst.msk [vmem:[%s3998_s28 + $0x38] sm:$0xf] %vm2724_vm3, %v3335_v17  ;;  %v3336_v23 = vpack.c.bf16 %v2099_v19, %v2099_v19  ;;  %v3400_v24 = vpack.c.bf16 %v2163_v20, %v2163_v20  ;;  %v1837_v25 = vmul.f32 %v3973_v61, %v1367_v21  ;;  %v1901_v26 = vmul.f32 %v3973_v61, %v1623_v22  ;;  %v1369_v27 = vpop.f32.mrb[33].mxu0  ;;  %v1625_v28 = vpop.f32.mrb[33].mxu1 }
 0x144   : > { %2803 = vst.msk [vmem:[%s3998_s28 + $0x138] sm:$0xf] %vm2724_vm3, %v3399_v18  ;;  %v1370_v29 = vpop.f32.mrb[34].mxu0  ;;  %v1626_v30 = vpop.f32.mrb[34].mxu1 }
 0x145   : > { %2740 = vst.msk [vmem:[%s3998_s28 + $0x3c] sm:$0xf] %vm2724_vm3, %v3336_v23  ;;  %2804 = vst.msk [vmem:[%s3998_s28 + $0x13c] sm:$0xf] %vm2724_vm3, %v3400_v24  ;;  %v1972_v31 = vadd.f32 %v3980_v63, %v1837_v25  ;;  %v2036_v32 = vadd.f32 %v3980_v63, %v1901_v26  ;;  %v1838_v33 = vmul.f32 %v3973_v61, %v1370_v29  ;;  %v1372_v35 = vpop.f32.mrb[35].mxu0  ;;  %v1628_v36 = vpop.f32.mrb[35].mxu1 }
 0x146   : > { %v1902_v34 = vmul.f32 %v3973_v61, %v1626_v30 }
 0x147   : > { %v2100_v37 = vmax.f32 %v1972_v31, 0.0  ;;  %v2164_v38 = vmax.f32 %v2036_v32, 0.0  ;;  %v1973_v39 = vadd.f32 %v3980_v63, %v1838_v33 }
 0x148   : > { %v2037_v40 = vadd.f32 %v3980_v63, %v1902_v34 }
 0x149   : > { %v3337_v41 = vpack.c.bf16 %v2100_v37, %v2100_v37  ;;  %v3401_v42 = vpack.c.bf16 %v2164_v38, %v2164_v38  ;;  %v2101_v43 = vmax.f32 %v1973_v39, 0.0 }
 0x14a   : > { %v2165_v44 = vmax.f32 %v2037_v40, 0.0  ;;  %v1375_v45 = vpop.f32.mrb[36].mxu0  ;;  %v1631_v46 = vpop.f32.mrb[36].mxu1 }
 0x14b   : > { %2741 = vst.msk [vmem:[%s3998_s28 + $0x40] sm:$0xf] %vm2724_vm3, %v3337_v41  ;;  %2805 = vst.msk [vmem:[%s3998_s28 + $0x140] sm:$0xf] %vm2724_vm3, %v3401_v42  ;;  %v3338_v47 = vpack.c.bf16 %v2101_v43, %v2101_v43  ;;  %v1839_v49 = vmul.f32 %v3973_v61, %v1375_v45  ;;  %v1903_v50 = vmul.f32 %v3973_v61, %v1631_v46  ;;  %v1377_v51 = vpop.f32.mrb[37].mxu0  ;;  %v1633_v52 = vpop.f32.mrb[37].mxu1 }
 0x14c   : > { %v3402_v48 = vpack.c.bf16 %v2165_v44, %v2165_v44  ;;  %v1378_v53 = vpop.f32.mrb[38].mxu0  ;;  %v1634_v54 = vpop.f32.mrb[38].mxu1 }
 0x14d   : > { %2742 = vst.msk [vmem:[%s3998_s28 + $0x44] sm:$0xf] %vm2724_vm3, %v3338_v47  ;;  %v1974_v55 = vadd.f32 %v3980_v63, %v1839_v49  ;;  %v2038_v56 = vadd.f32 %v3980_v63, %v1903_v50  ;;  %v1840_v57 = vmul.f32 %v3973_v61, %v1378_v53  ;;  %v1904_v58 = vmul.f32 %v3973_v61, %v1634_v54  ;;  %v1380_v59 = vpop.f32.mrb[39].mxu0  ;;  %v1636_v60 = vpop.f32.mrb[39].mxu1 }
 0x14e   : > { %2806 = vst.msk [vmem:[%s3998_s28 + $0x144] sm:$0xf] %vm2724_vm3, %v3402_v48 }
 0x14f   : > { %v2102_v62 = vmax.f32 %v1974_v55, 0.0  ;;  %v2166_v0 = vmax.f32 %v2038_v56, 0.0  ;;  %v1975_v1 = vadd.f32 %v3980_v63, %v1840_v57  ;;  %v2039_v2 = vadd.f32 %v3980_v63, %v1904_v58 }
 0x151   : > { %v3339_v3 = vpack.c.bf16 %v2102_v62, %v2102_v62  ;;  %v3403_v4 = vpack.c.bf16 %v2166_v0, %v2166_v0  ;;  %v2103_v5 = vmax.f32 %v1975_v1, 0.0  ;;  %v2167_v6 = vmax.f32 %v2039_v2, 0.0 }
 0x152   : > { %v1383_v7 = vpop.f32.mrb[40].mxu0  ;;  %v1639_v8 = vpop.f32.mrb[40].mxu1 }
 0x153   : > { %2743 = vst.msk [vmem:[%s3998_s28 + $0x48] sm:$0xf] %vm2724_vm3, %v3339_v3  ;;  %2807 = vst.msk [vmem:[%s3998_s28 + $0x148] sm:$0xf] %vm2724_vm3, %v3403_v4  ;;  %v3340_v9 = vpack.c.bf16 %v2103_v5, %v2103_v5  ;;  %v3404_v10 = vpack.c.bf16 %v2167_v6, %v2167_v6  ;;  %v1841_v11 = vmul.f32 %v3973_v61, %v1383_v7  ;;  %v1385_v13 = vpop.f32.mrb[41].mxu0  ;;  %v1641_v14 = vpop.f32.mrb[41].mxu1 }
 0x154   : > { %v1905_v12 = vmul.f32 %v3973_v61, %v1639_v8  ;;  %v1386_v15 = vpop.f32.mrb[42].mxu0  ;;  %v1642_v16 = vpop.f32.mrb[42].mxu1 }
 0x155   : > { %2744 = vst.msk [vmem:[%s3998_s28 + $0x4c] sm:$0xf] %vm2724_vm3, %v3340_v9  ;;  %2808 = vst.msk [vmem:[%s3998_s28 + $0x14c] sm:$0xf] %vm2724_vm3, %v3404_v10  ;;  %v1976_v17 = vadd.f32 %v3980_v63, %v1841_v11  ;;  %v1842_v19 = vmul.f32 %v3973_v61, %v1386_v15  ;;  %v1906_v20 = vmul.f32 %v3973_v61, %v1642_v16  ;;  %v1388_v21 = vpop.f32.mrb[43].mxu0  ;;  %v1644_v22 = vpop.f32.mrb[43].mxu1 }
 0x156   : > { %v2040_v18 = vadd.f32 %v3980_v63, %v1905_v12 }
 0x157   : > { %v2104_v23 = vmax.f32 %v1976_v17, 0.0  ;;  %v1977_v25 = vadd.f32 %v3980_v63, %v1842_v19  ;;  %v2041_v26 = vadd.f32 %v3980_v63, %v1906_v20 }
 0x158   : > { %v2168_v24 = vmax.f32 %v2040_v18, 0.0 }
 0x159   : > { %v3341_v27 = vpack.c.bf16 %v2104_v23, %v2104_v23  ;;  %v2105_v29 = vmax.f32 %v1977_v25, 0.0  ;;  %v2169_v30 = vmax.f32 %v2041_v26, 0.0 }
 0x15a   : > { %v3405_v28 = vpack.c.bf16 %v2168_v24, %v2168_v24  ;;  %v1391_v31 = vpop.f32.mrb[44].mxu0  ;;  %v1647_v32 = vpop.f32.mrb[44].mxu1 }
 0x15b   : > { %2745 = vst.msk [vmem:[%s3998_s28 + $0x50] sm:$0xf] %vm2724_vm3, %v3341_v27  ;;  %v3342_v33 = vpack.c.bf16 %v2105_v29, %v2105_v29  ;;  %v3406_v34 = vpack.c.bf16 %v2169_v30, %v2169_v30  ;;  %v1843_v35 = vmul.f32 %v3973_v61, %v1391_v31  ;;  %v1907_v36 = vmul.f32 %v3973_v61, %v1647_v32  ;;  %v1393_v37 = vpop.f32.mrb[45].mxu0  ;;  %v1649_v38 = vpop.f32.mrb[45].mxu1 }
 0x15c   : > { %2809 = vst.msk [vmem:[%s3998_s28 + $0x150] sm:$0xf] %vm2724_vm3, %v3405_v28  ;;  %v1394_v39 = vpop.f32.mrb[46].mxu0  ;;  %v1650_v40 = vpop.f32.mrb[46].mxu1 }
 0x15d   : > { %2746 = vst.msk [vmem:[%s3998_s28 + $0x54] sm:$0xf] %vm2724_vm3, %v3342_v33  ;;  %2810 = vst.msk [vmem:[%s3998_s28 + $0x154] sm:$0xf] %vm2724_vm3, %v3406_v34  ;;  %v1978_v41 = vadd.f32 %v3980_v63, %v1843_v35  ;;  %v2042_v42 = vadd.f32 %v3980_v63, %v1907_v36  ;;  %v1844_v43 = vmul.f32 %v3973_v61, %v1394_v39  ;;  %v1396_v45 = vpop.f32.mrb[47].mxu0  ;;  %v1652_v46 = vpop.f32.mrb[47].mxu1 }
 0x15e   : > { %v1908_v44 = vmul.f32 %v3973_v61, %v1650_v40 }
 0x15f   : > { %v2106_v47 = vmax.f32 %v1978_v41, 0.0  ;;  %v2170_v48 = vmax.f32 %v2042_v42, 0.0  ;;  %v1979_v49 = vadd.f32 %v3980_v63, %v1844_v43 }
 0x160   : > { %v2043_v50 = vadd.f32 %v3980_v63, %v1908_v44 }
 0x161   : > { %v3343_v51 = vpack.c.bf16 %v2106_v47, %v2106_v47  ;;  %v3407_v52 = vpack.c.bf16 %v2170_v48, %v2170_v48  ;;  %v2107_v53 = vmax.f32 %v1979_v49, 0.0 }
 0x162   : > { %v2171_v54 = vmax.f32 %v2043_v50, 0.0  ;;  %v1399_v55 = vpop.f32.mrb[48].mxu0  ;;  %v1655_v56 = vpop.f32.mrb[48].mxu1 }
 0x163   : > { %2747 = vst.msk [vmem:[%s3998_s28 + $0x58] sm:$0xf] %vm2724_vm3, %v3343_v51  ;;  %2811 = vst.msk [vmem:[%s3998_s28 + $0x158] sm:$0xf] %vm2724_vm3, %v3407_v52  ;;  %v3344_v57 = vpack.c.bf16 %v2107_v53, %v2107_v53  ;;  %v1845_v59 = vmul.f32 %v3973_v61, %v1399_v55  ;;  %v1909_v60 = vmul.f32 %v3973_v61, %v1655_v56  ;;  %v1401_v62 = vpop.f32.mrb[49].mxu0  ;;  %v1657_v0 = vpop.f32.mrb[49].mxu1 }
 0x164   : > { %v3408_v58 = vpack.c.bf16 %v2171_v54, %v2171_v54  ;;  %v1402_v1 = vpop.f32.mrb[50].mxu0  ;;  %v1658_v2 = vpop.f32.mrb[50].mxu1 }
 0x165   : > { %2748 = vst.msk [vmem:[%s3998_s28 + $0x5c] sm:$0xf] %vm2724_vm3, %v3344_v57  ;;  %v1980_v3 = vadd.f32 %v3980_v63, %v1845_v59  ;;  %v2044_v4 = vadd.f32 %v3980_v63, %v1909_v60  ;;  %v1846_v5 = vmul.f32 %v3973_v61, %v1402_v1  ;;  %v1910_v6 = vmul.f32 %v3973_v61, %v1658_v2  ;;  %v1404_v7 = vpop.f32.mrb[51].mxu0  ;;  %v1660_v8 = vpop.f32.mrb[51].mxu1 }
 0x166   : > { %2812 = vst.msk [vmem:[%s3998_s28 + $0x15c] sm:$0xf] %vm2724_vm3, %v3408_v58 }
 0x167   : > { %v2108_v9 = vmax.f32 %v1980_v3, 0.0  ;;  %v2172_v10 = vmax.f32 %v2044_v4, 0.0  ;;  %v1981_v11 = vadd.f32 %v3980_v63, %v1846_v5  ;;  %v2045_v12 = vadd.f32 %v3980_v63, %v1910_v6 }
 0x169   : > { %v3345_v13 = vpack.c.bf16 %v2108_v9, %v2108_v9  ;;  %v3409_v14 = vpack.c.bf16 %v2172_v10, %v2172_v10  ;;  %v2109_v15 = vmax.f32 %v1981_v11, 0.0  ;;  %v2173_v16 = vmax.f32 %v2045_v12, 0.0 }
 0x16a   : > { %v1407_v17 = vpop.f32.mrb[52].mxu0  ;;  %v1663_v18 = vpop.f32.mrb[52].mxu1 }
 0x16b   : > { %2749 = vst.msk [vmem:[%s3998_s28 + $0x60] sm:$0xf] %vm2724_vm3, %v3345_v13  ;;  %2813 = vst.msk [vmem:[%s3998_s28 + $0x160] sm:$0xf] %vm2724_vm3, %v3409_v14  ;;  %v3346_v19 = vpack.c.bf16 %v2109_v15, %v2109_v15  ;;  %v3410_v20 = vpack.c.bf16 %v2173_v16, %v2173_v16  ;;  %v1847_v21 = vmul.f32 %v3973_v61, %v1407_v17  ;;  %v1409_v23 = vpop.f32.mrb[53].mxu0  ;;  %v1665_v24 = vpop.f32.mrb[53].mxu1 }
 0x16c   : > { %v1911_v22 = vmul.f32 %v3973_v61, %v1663_v18  ;;  %v1410_v25 = vpop.f32.mrb[54].mxu0  ;;  %v1666_v26 = vpop.f32.mrb[54].mxu1 }
 0x16d   : > { %2750 = vst.msk [vmem:[%s3998_s28 + $0x64] sm:$0xf] %vm2724_vm3, %v3346_v19  ;;  %2814 = vst.msk [vmem:[%s3998_s28 + $0x164] sm:$0xf] %vm2724_vm3, %v3410_v20  ;;  %v1982_v27 = vadd.f32 %v3980_v63, %v1847_v21  ;;  %v1848_v29 = vmul.f32 %v3973_v61, %v1410_v25  ;;  %v1912_v30 = vmul.f32 %v3973_v61, %v1666_v26  ;;  %v1412_v31 = vpop.f32.mrb[55].mxu0  ;;  %v1668_v32 = vpop.f32.mrb[55].mxu1 }
 0x16e   : > { %v2046_v28 = vadd.f32 %v3980_v63, %v1911_v22 }
 0x16f   : > { %v2110_v33 = vmax.f32 %v1982_v27, 0.0  ;;  %v1983_v35 = vadd.f32 %v3980_v63, %v1848_v29  ;;  %v2047_v36 = vadd.f32 %v3980_v63, %v1912_v30 }
 0x170   : > { %v2174_v34 = vmax.f32 %v2046_v28, 0.0 }
 0x171   : > { %v3347_v37 = vpack.c.bf16 %v2110_v33, %v2110_v33  ;;  %v2111_v39 = vmax.f32 %v1983_v35, 0.0  ;;  %v2175_v40 = vmax.f32 %v2047_v36, 0.0 }
 0x172   : > { %v3411_v38 = vpack.c.bf16 %v2174_v34, %v2174_v34  ;;  %v1415_v41 = vpop.f32.mrb[56].mxu0  ;;  %v1671_v42 = vpop.f32.mrb[56].mxu1 }
 0x173   : > { %2751 = vst.msk [vmem:[%s3998_s28 + $0x68] sm:$0xf] %vm2724_vm3, %v3347_v37  ;;  %v3348_v43 = vpack.c.bf16 %v2111_v39, %v2111_v39  ;;  %v3412_v44 = vpack.c.bf16 %v2175_v40, %v2175_v40  ;;  %v1849_v45 = vmul.f32 %v3973_v61, %v1415_v41  ;;  %v1913_v46 = vmul.f32 %v3973_v61, %v1671_v42  ;;  %v1417_v47 = vpop.f32.mrb[57].mxu0  ;;  %v1673_v48 = vpop.f32.mrb[57].mxu1 }
 0x174   : > { %2815 = vst.msk [vmem:[%s3998_s28 + $0x168] sm:$0xf] %vm2724_vm3, %v3411_v38  ;;  %v1418_v49 = vpop.f32.mrb[58].mxu0  ;;  %v1674_v50 = vpop.f32.mrb[58].mxu1 }
 0x175   : > { %2752 = vst.msk [vmem:[%s3998_s28 + $0x6c] sm:$0xf] %vm2724_vm3, %v3348_v43  ;;  %2816 = vst.msk [vmem:[%s3998_s28 + $0x16c] sm:$0xf] %vm2724_vm3, %v3412_v44  ;;  %v1984_v51 = vadd.f32 %v3980_v63, %v1849_v45  ;;  %v2048_v52 = vadd.f32 %v3980_v63, %v1913_v46  ;;  %v1850_v53 = vmul.f32 %v3973_v61, %v1418_v49  ;;  %v1420_v55 = vpop.f32.mrb[59].mxu0  ;;  %v1676_v56 = vpop.f32.mrb[59].mxu1 }
 0x176   : > { %v1914_v54 = vmul.f32 %v3973_v61, %v1674_v50 }
 0x177   : > { %v2112_v57 = vmax.f32 %v1984_v51, 0.0  ;;  %v2176_v58 = vmax.f32 %v2048_v52, 0.0  ;;  %v1985_v59 = vadd.f32 %v3980_v63, %v1850_v53 }
 0x178   : > { %v2049_v60 = vadd.f32 %v3980_v63, %v1914_v54  ;;  %v4285_v54 = vld [vmem:[%s4547_s2] ss:$0 sm:$0xff] }
 0x179   : > { %v3349_v62 = vpack.c.bf16 %v2112_v57, %v2112_v57  ;;  %v3413_v0 = vpack.c.bf16 %v2176_v58, %v2176_v58  ;;  %v2113_v1 = vmax.f32 %v1985_v59, 0.0 }
 0x17a   : > { %v2177_v2 = vmax.f32 %v2049_v60, 0.0  ;;  %v1423_v3 = vpop.f32.mrb[60].mxu0  ;;  %v1679_v4 = vpop.f32.mrb[60].mxu1  ;;  %v4296_v60 = vld [vmem:[%s4548_s3] ss:$0 sm:$0xff] }
 0x17b   : > { %2753 = vst.msk [vmem:[%s3998_s28 + $0x70] sm:$0xf] %vm2724_vm3, %v3349_v62  ;;  %2817 = vst.msk [vmem:[%s3998_s28 + $0x170] sm:$0xf] %vm2724_vm3, %v3413_v0  ;;  %v3350_v5 = vpack.c.bf16 %v2113_v1, %v2113_v1  ;;  %v1851_v7 = vmul.f32 %v3973_v61, %v1423_v3  ;;  %v1915_v8 = vmul.f32 %v3973_v61, %v1679_v4  ;;  %v1425_v9 = vpop.f32.mrb[61].mxu0  ;;  %v1681_v10 = vpop.f32.mrb[61].mxu1 }
 0x17c   : > { %v3414_v6 = vpack.c.bf16 %v2177_v2, %v2177_v2  ;;  %v1426_v11 = vpop.f32.mrb[62].mxu0  ;;  %v1682_v12 = vpop.f32.mrb[62].mxu1 }
 0x17d   : > { %2754 = vst.msk [vmem:[%s3998_s28 + $0x74] sm:$0xf] %vm2724_vm3, %v3350_v5  ;;  %v1986_v13 = vadd.f32 %v3980_v63, %v1851_v7  ;;  %v2050_v14 = vadd.f32 %v3980_v63, %v1915_v8  ;;  %v1852_v15 = vmul.f32 %v3973_v61, %v1426_v11  ;;  %v1916_v16 = vmul.f32 %v3973_v61, %v1682_v12  ;;  %v1428_v17 = vpop.f32.mrb[63].mxu0  ;;  %v1684_v18 = vpop.f32.mrb[63].mxu1 }
 0x17e   : > { %2818 = vst.msk [vmem:[%s3998_s28 + $0x174] sm:$0xf] %vm2724_vm3, %v3414_v6 }
 0x17f   : > { %v2114_v19 = vmax.f32 %v1986_v13, 0.0  ;;  %v2178_v20 = vmax.f32 %v2050_v14, 0.0  ;;  %v1987_v21 = vadd.f32 %v3980_v63, %v1852_v15  ;;  %v2051_v22 = vadd.f32 %v3980_v63, %v1916_v16 }
 0x181   : > { %v3351_v23 = vpack.c.bf16 %v2114_v19, %v2114_v19  ;;  %v3415_v24 = vpack.c.bf16 %v2178_v20, %v2178_v20  ;;  %v2115_v25 = vmax.f32 %v1987_v21, 0.0  ;;  %v2179_v26 = vmax.f32 %v2051_v22, 0.0 }
 0x182   : > { %v1431_v27 = vpop.f32.mrb[64].mxu0  ;;  %v1687_v28 = vpop.f32.mrb[64].mxu1 }
 0x183   : > { %2755 = vst.msk [vmem:[%s3998_s28 + $0x78] sm:$0xf] %vm2724_vm3, %v3351_v23  ;;  %2819 = vst.msk [vmem:[%s3998_s28 + $0x178] sm:$0xf] %vm2724_vm3, %v3415_v24  ;;  %v3352_v29 = vpack.c.bf16 %v2115_v25, %v2115_v25  ;;  %v3416_v30 = vpack.c.bf16 %v2179_v26, %v2179_v26  ;;  %v1853_v31 = vmul.f32 %v3973_v61, %v1431_v27  ;;  %v1433_v33 = vpop.f32.mrb[65].mxu0  ;;  %v1689_v34 = vpop.f32.mrb[65].mxu1 }
 0x184   : > { %v1917_v32 = vmul.f32 %v3973_v61, %v1687_v28  ;;  %v1434_v35 = vpop.f32.mrb[66].mxu0  ;;  %v1690_v36 = vpop.f32.mrb[66].mxu1 }
 0x185   : > { %2756 = vst.msk [vmem:[%s3998_s28 + $0x7c] sm:$0xf] %vm2724_vm3, %v3352_v29  ;;  %2820 = vst.msk [vmem:[%s3998_s28 + $0x17c] sm:$0xf] %vm2724_vm3, %v3416_v30  ;;  %v1988_v37 = vadd.f32 %v3980_v63, %v1853_v31  ;;  %v1854_v39 = vmul.f32 %v3973_v61, %v1434_v35  ;;  %v1918_v40 = vmul.f32 %v3973_v61, %v1690_v36  ;;  %v1436_v41 = vpop.f32.mrb[67].mxu0  ;;  %v1692_v42 = vpop.f32.mrb[67].mxu1 }
 0x186   : > { %v2052_v38 = vadd.f32 %v3980_v63, %v1917_v32 }
 0x187   : > { %v2116_v43 = vmax.f32 %v1988_v37, 0.0  ;;  %v1989_v45 = vadd.f32 %v3980_v63, %v1854_v39  ;;  %v2053_v46 = vadd.f32 %v3980_v63, %v1918_v40 }
 0x188   : > { %v2180_v44 = vmax.f32 %v2052_v38, 0.0 }
 0x189   : > { %v3353_v47 = vpack.c.bf16 %v2116_v43, %v2116_v43  ;;  %v2117_v49 = vmax.f32 %v1989_v45, 0.0  ;;  %v2181_v50 = vmax.f32 %v2053_v46, 0.0 }
 0x18a   : > { %v3417_v48 = vpack.c.bf16 %v2180_v44, %v2180_v44  ;;  %v1439_v51 = vpop.f32.mrb[68].mxu0  ;;  %v1695_v52 = vpop.f32.mrb[68].mxu1 }
 0x18b   : > { %2757 = vst.msk [vmem:[%s3998_s28 + $0x80] sm:$0xf] %vm2724_vm3, %v3353_v47  ;;  %v3354_v61 = vpack.c.bf16 %v2117_v49, %v2117_v49  ;;  %v3418_v53 = vpack.c.bf16 %v2181_v50, %v2181_v50  ;;  %v1855_v63 = vmul.f32 %v4285_v54, %v1439_v51  ;;  %v1919_v55 = vmul.f32 %v4285_v54, %v1695_v52  ;;  %v1441_v56 = vpop.f32.mrb[69].mxu0  ;;  %v1697_v57 = vpop.f32.mrb[69].mxu1 }
 0x18c   : > { %2821 = vst.msk [vmem:[%s3998_s28 + $0x180] sm:$0xf] %vm2724_vm3, %v3417_v48  ;;  %v1442_v58 = vpop.f32.mrb[70].mxu0  ;;  %v1698_v59 = vpop.f32.mrb[70].mxu1 }
 0x18d   : > { %2758 = vst.msk [vmem:[%s3998_s28 + $0x84] sm:$0xf] %vm2724_vm3, %v3354_v61  ;;  %2822 = vst.msk [vmem:[%s3998_s28 + $0x184] sm:$0xf] %vm2724_vm3, %v3418_v53  ;;  %v1990_v62 = vadd.f32 %v4296_v60, %v1855_v63  ;;  %v2054_v0 = vadd.f32 %v4296_v60, %v1919_v55  ;;  %v1856_v1 = vmul.f32 %v4285_v54, %v1442_v58  ;;  %v1444_v3 = vpop.f32.mrb[71].mxu0  ;;  %v1700_v4 = vpop.f32.mrb[71].mxu1 }
 0x18e   : > { %v1920_v2 = vmul.f32 %v4285_v54, %v1698_v59 }
 0x18f   : > { %v2118_v5 = vmax.f32 %v1990_v62, 0.0  ;;  %v2182_v6 = vmax.f32 %v2054_v0, 0.0  ;;  %v1991_v7 = vadd.f32 %v4296_v60, %v1856_v1 }
 0x190   : > { %v2055_v8 = vadd.f32 %v4296_v60, %v1920_v2 }
 0x191   : > { %v3355_v9 = vpack.c.bf16 %v2118_v5, %v2118_v5  ;;  %v3419_v10 = vpack.c.bf16 %v2182_v6, %v2182_v6  ;;  %v2119_v11 = vmax.f32 %v1991_v7, 0.0 }
 0x192   : > { %v2183_v12 = vmax.f32 %v2055_v8, 0.0  ;;  %v1447_v13 = vpop.f32.mrb[72].mxu0  ;;  %v1703_v14 = vpop.f32.mrb[72].mxu1 }
 0x193   : > { %2759 = vst.msk [vmem:[%s3998_s28 + $0x88] sm:$0xf] %vm2724_vm3, %v3355_v9  ;;  %2823 = vst.msk [vmem:[%s3998_s28 + $0x188] sm:$0xf] %vm2724_vm3, %v3419_v10  ;;  %v3356_v15 = vpack.c.bf16 %v2119_v11, %v2119_v11  ;;  %v1857_v17 = vmul.f32 %v4285_v54, %v1447_v13  ;;  %v1921_v18 = vmul.f32 %v4285_v54, %v1703_v14  ;;  %v1449_v19 = vpop.f32.mrb[73].mxu0  ;;  %v1705_v20 = vpop.f32.mrb[73].mxu1 }
 0x194   : > { %v3420_v16 = vpack.c.bf16 %v2183_v12, %v2183_v12  ;;  %v1450_v21 = vpop.f32.mrb[74].mxu0  ;;  %v1706_v22 = vpop.f32.mrb[74].mxu1 }
 0x195   : > { %2760 = vst.msk [vmem:[%s3998_s28 + $0x8c] sm:$0xf] %vm2724_vm3, %v3356_v15  ;;  %v1992_v23 = vadd.f32 %v4296_v60, %v1857_v17  ;;  %v2056_v24 = vadd.f32 %v4296_v60, %v1921_v18  ;;  %v1858_v25 = vmul.f32 %v4285_v54, %v1450_v21  ;;  %v1922_v26 = vmul.f32 %v4285_v54, %v1706_v22  ;;  %v1452_v27 = vpop.f32.mrb[75].mxu0  ;;  %v1708_v28 = vpop.f32.mrb[75].mxu1 }
 0x196   : > { %2824 = vst.msk [vmem:[%s3998_s28 + $0x18c] sm:$0xf] %vm2724_vm3, %v3420_v16 }
 0x197   : > { %v2120_v29 = vmax.f32 %v1992_v23, 0.0  ;;  %v2184_v30 = vmax.f32 %v2056_v24, 0.0  ;;  %v1993_v31 = vadd.f32 %v4296_v60, %v1858_v25  ;;  %v2057_v32 = vadd.f32 %v4296_v60, %v1922_v26 }
 0x199   : > { %v3357_v33 = vpack.c.bf16 %v2120_v29, %v2120_v29  ;;  %v3421_v34 = vpack.c.bf16 %v2184_v30, %v2184_v30  ;;  %v2121_v35 = vmax.f32 %v1993_v31, 0.0  ;;  %v2185_v36 = vmax.f32 %v2057_v32, 0.0 }
 0x19a   : > { %v1455_v37 = vpop.f32.mrb[76].mxu0  ;;  %v1711_v38 = vpop.f32.mrb[76].mxu1 }
 0x19b   : > { %2761 = vst.msk [vmem:[%s3998_s28 + $0x90] sm:$0xf] %vm2724_vm3, %v3357_v33  ;;  %2825 = vst.msk [vmem:[%s3998_s28 + $0x190] sm:$0xf] %vm2724_vm3, %v3421_v34  ;;  %v3358_v39 = vpack.c.bf16 %v2121_v35, %v2121_v35  ;;  %v3422_v40 = vpack.c.bf16 %v2185_v36, %v2185_v36  ;;  %v1859_v41 = vmul.f32 %v4285_v54, %v1455_v37  ;;  %v1457_v43 = vpop.f32.mrb[77].mxu0  ;;  %v1713_v44 = vpop.f32.mrb[77].mxu1 }
 0x19c   : > { %v1923_v42 = vmul.f32 %v4285_v54, %v1711_v38  ;;  %v1458_v45 = vpop.f32.mrb[78].mxu0  ;;  %v1714_v46 = vpop.f32.mrb[78].mxu1 }
 0x19d   : > { %2762 = vst.msk [vmem:[%s3998_s28 + $0x94] sm:$0xf] %vm2724_vm3, %v3358_v39  ;;  %2826 = vst.msk [vmem:[%s3998_s28 + $0x194] sm:$0xf] %vm2724_vm3, %v3422_v40  ;;  %v1994_v47 = vadd.f32 %v4296_v60, %v1859_v41  ;;  %v1860_v49 = vmul.f32 %v4285_v54, %v1458_v45  ;;  %v1924_v50 = vmul.f32 %v4285_v54, %v1714_v46  ;;  %v1460_v51 = vpop.f32.mrb[79].mxu0  ;;  %v1716_v52 = vpop.f32.mrb[79].mxu1 }
 0x19e   : > { %v2058_v48 = vadd.f32 %v4296_v60, %v1923_v42 }
 0x19f   : > { %v2122_v61 = vmax.f32 %v1994_v47, 0.0  ;;  %v1995_v63 = vadd.f32 %v4296_v60, %v1860_v49  ;;  %v2059_v55 = vadd.f32 %v4296_v60, %v1924_v50 }
 0x1a0   : > { %v2186_v53 = vmax.f32 %v2058_v48, 0.0 }
 0x1a1   : > { %v3359_v56 = vpack.c.bf16 %v2122_v61, %v2122_v61  ;;  %v2123_v58 = vmax.f32 %v1995_v63, 0.0  ;;  %v2187_v59 = vmax.f32 %v2059_v55, 0.0 }
 0x1a2   : > { %v3423_v57 = vpack.c.bf16 %v2186_v53, %v2186_v53  ;;  %v1463_v62 = vpop.f32.mrb[80].mxu0  ;;  %v1719_v0 = vpop.f32.mrb[80].mxu1 }
 0x1a3   : > { %2763 = vst.msk [vmem:[%s3998_s28 + $0x98] sm:$0xf] %vm2724_vm3, %v3359_v56  ;;  %v3360_v1 = vpack.c.bf16 %v2123_v58, %v2123_v58  ;;  %v3424_v2 = vpack.c.bf16 %v2187_v59, %v2187_v59  ;;  %v1861_v3 = vmul.f32 %v4285_v54, %v1463_v62  ;;  %v1925_v4 = vmul.f32 %v4285_v54, %v1719_v0  ;;  %v1465_v5 = vpop.f32.mrb[81].mxu0  ;;  %v1721_v6 = vpop.f32.mrb[81].mxu1 }
 0x1a4   : > { %2827 = vst.msk [vmem:[%s3998_s28 + $0x198] sm:$0xf] %vm2724_vm3, %v3423_v57  ;;  %v1466_v7 = vpop.f32.mrb[82].mxu0  ;;  %v1722_v8 = vpop.f32.mrb[82].mxu1 }
 0x1a5   : > { %2764 = vst.msk [vmem:[%s3998_s28 + $0x9c] sm:$0xf] %vm2724_vm3, %v3360_v1  ;;  %2828 = vst.msk [vmem:[%s3998_s28 + $0x19c] sm:$0xf] %vm2724_vm3, %v3424_v2  ;;  %v1996_v9 = vadd.f32 %v4296_v60, %v1861_v3  ;;  %v2060_v10 = vadd.f32 %v4296_v60, %v1925_v4  ;;  %v1862_v11 = vmul.f32 %v4285_v54, %v1466_v7  ;;  %v1468_v13 = vpop.f32.mrb[83].mxu0  ;;  %v1724_v14 = vpop.f32.mrb[83].mxu1 }
 0x1a6   : > { %v1926_v12 = vmul.f32 %v4285_v54, %v1722_v8 }
 0x1a7   : > { %v2124_v15 = vmax.f32 %v1996_v9, 0.0  ;;  %v2188_v16 = vmax.f32 %v2060_v10, 0.0  ;;  %v1997_v17 = vadd.f32 %v4296_v60, %v1862_v11 }
 0x1a8   : > { %v2061_v18 = vadd.f32 %v4296_v60, %v1926_v12 }
 0x1a9   : > { %v3361_v19 = vpack.c.bf16 %v2124_v15, %v2124_v15  ;;  %v3425_v20 = vpack.c.bf16 %v2188_v16, %v2188_v16  ;;  %v2125_v21 = vmax.f32 %v1997_v17, 0.0 }
 0x1aa   : > { %v2189_v22 = vmax.f32 %v2061_v18, 0.0  ;;  %v1471_v23 = vpop.f32.mrb[84].mxu0  ;;  %v1727_v24 = vpop.f32.mrb[84].mxu1 }
 0x1ab   : > { %2765 = vst.msk [vmem:[%s3998_s28 + $0xa0] sm:$0xf] %vm2724_vm3, %v3361_v19  ;;  %2829 = vst.msk [vmem:[%s3998_s28 + $0x1a0] sm:$0xf] %vm2724_vm3, %v3425_v20  ;;  %v3362_v25 = vpack.c.bf16 %v2125_v21, %v2125_v21  ;;  %v1863_v27 = vmul.f32 %v4285_v54, %v1471_v23  ;;  %v1927_v28 = vmul.f32 %v4285_v54, %v1727_v24  ;;  %v1473_v29 = vpop.f32.mrb[85].mxu0  ;;  %v1729_v30 = vpop.f32.mrb[85].mxu1 }
 0x1ac   : > { %v3426_v26 = vpack.c.bf16 %v2189_v22, %v2189_v22  ;;  %v1474_v31 = vpop.f32.mrb[86].mxu0  ;;  %v1730_v32 = vpop.f32.mrb[86].mxu1 }
 0x1ad   : > { %2766 = vst.msk [vmem:[%s3998_s28 + $0xa4] sm:$0xf] %vm2724_vm3, %v3362_v25  ;;  %v1998_v33 = vadd.f32 %v4296_v60, %v1863_v27  ;;  %v2062_v34 = vadd.f32 %v4296_v60, %v1927_v28  ;;  %v1864_v35 = vmul.f32 %v4285_v54, %v1474_v31  ;;  %v1928_v36 = vmul.f32 %v4285_v54, %v1730_v32  ;;  %v1476_v37 = vpop.f32.mrb[87].mxu0  ;;  %v1732_v38 = vpop.f32.mrb[87].mxu1 }
 0x1ae   : > { %2830 = vst.msk [vmem:[%s3998_s28 + $0x1a4] sm:$0xf] %vm2724_vm3, %v3426_v26 }
 0x1af   : > { %v2126_v39 = vmax.f32 %v1998_v33, 0.0  ;;  %v2190_v40 = vmax.f32 %v2062_v34, 0.0  ;;  %v1999_v41 = vadd.f32 %v4296_v60, %v1864_v35  ;;  %v2063_v42 = vadd.f32 %v4296_v60, %v1928_v36 }
 0x1b1   : > { %v3363_v43 = vpack.c.bf16 %v2126_v39, %v2126_v39  ;;  %v3427_v44 = vpack.c.bf16 %v2190_v40, %v2190_v40  ;;  %v2127_v45 = vmax.f32 %v1999_v41, 0.0  ;;  %v2191_v46 = vmax.f32 %v2063_v42, 0.0 }
 0x1b2   : > { %v1479_v47 = vpop.f32.mrb[88].mxu0  ;;  %v1735_v48 = vpop.f32.mrb[88].mxu1 }
 0x1b3   : > { %2767 = vst.msk [vmem:[%s3998_s28 + $0xa8] sm:$0xf] %vm2724_vm3, %v3363_v43  ;;  %2831 = vst.msk [vmem:[%s3998_s28 + $0x1a8] sm:$0xf] %vm2724_vm3, %v3427_v44  ;;  %v3364_v49 = vpack.c.bf16 %v2127_v45, %v2127_v45  ;;  %v3428_v50 = vpack.c.bf16 %v2191_v46, %v2191_v46  ;;  %v1865_v51 = vmul.f32 %v4285_v54, %v1479_v47  ;;  %v1481_v61 = vpop.f32.mrb[89].mxu0  ;;  %v1737_v53 = vpop.f32.mrb[89].mxu1 }
 0x1b4   : > { %v1929_v52 = vmul.f32 %v4285_v54, %v1735_v48  ;;  %v1482_v63 = vpop.f32.mrb[90].mxu0  ;;  %v1738_v55 = vpop.f32.mrb[90].mxu1 }
 0x1b5   : > { %2768 = vst.msk [vmem:[%s3998_s28 + $0xac] sm:$0xf] %vm2724_vm3, %v3364_v49  ;;  %2832 = vst.msk [vmem:[%s3998_s28 + $0x1ac] sm:$0xf] %vm2724_vm3, %v3428_v50  ;;  %v2000_v56 = vadd.f32 %v4296_v60, %v1865_v51  ;;  %v1866_v58 = vmul.f32 %v4285_v54, %v1482_v63  ;;  %v1930_v59 = vmul.f32 %v4285_v54, %v1738_v55  ;;  %v1484_v62 = vpop.f32.mrb[91].mxu0  ;;  %v1740_v0 = vpop.f32.mrb[91].mxu1 }
 0x1b6   : > { %v2064_v57 = vadd.f32 %v4296_v60, %v1929_v52 }
 0x1b7   : > { %v2128_v1 = vmax.f32 %v2000_v56, 0.0  ;;  %v2001_v3 = vadd.f32 %v4296_v60, %v1866_v58  ;;  %v2065_v4 = vadd.f32 %v4296_v60, %v1930_v59 }
 0x1b8   : > { %v2192_v2 = vmax.f32 %v2064_v57, 0.0 }
 0x1b9   : > { %v3365_v5 = vpack.c.bf16 %v2128_v1, %v2128_v1  ;;  %v2129_v7 = vmax.f32 %v2001_v3, 0.0  ;;  %v2193_v8 = vmax.f32 %v2065_v4, 0.0 }
 0x1ba   : > { %v3429_v6 = vpack.c.bf16 %v2192_v2, %v2192_v2  ;;  %v1487_v9 = vpop.f32.mrb[92].mxu0  ;;  %v1743_v10 = vpop.f32.mrb[92].mxu1 }
 0x1bb   : > { %2769 = vst.msk [vmem:[%s3998_s28 + $0xb0] sm:$0xf] %vm2724_vm3, %v3365_v5  ;;  %v3366_v11 = vpack.c.bf16 %v2129_v7, %v2129_v7  ;;  %v3430_v12 = vpack.c.bf16 %v2193_v8, %v2193_v8  ;;  %v1867_v13 = vmul.f32 %v4285_v54, %v1487_v9  ;;  %v1931_v14 = vmul.f32 %v4285_v54, %v1743_v10  ;;  %v1489_v15 = vpop.f32.mrb[93].mxu0  ;;  %v1745_v16 = vpop.f32.mrb[93].mxu1 }
 0x1bc   : > { %2833 = vst.msk [vmem:[%s3998_s28 + $0x1b0] sm:$0xf] %vm2724_vm3, %v3429_v6  ;;  %v1490_v17 = vpop.f32.mrb[94].mxu0  ;;  %v1746_v18 = vpop.f32.mrb[94].mxu1 }
 0x1bd   : > { %2770 = vst.msk [vmem:[%s3998_s28 + $0xb4] sm:$0xf] %vm2724_vm3, %v3366_v11  ;;  %2834 = vst.msk [vmem:[%s3998_s28 + $0x1b4] sm:$0xf] %vm2724_vm3, %v3430_v12  ;;  %v2002_v19 = vadd.f32 %v4296_v60, %v1867_v13  ;;  %v2066_v20 = vadd.f32 %v4296_v60, %v1931_v14  ;;  %v1868_v21 = vmul.f32 %v4285_v54, %v1490_v17  ;;  %v1492_v23 = vpop.f32.mrb[95].mxu0  ;;  %v1748_v24 = vpop.f32.mrb[95].mxu1 }
 0x1be   : > { %v1932_v22 = vmul.f32 %v4285_v54, %v1746_v18 }
 0x1bf   : > { %v2130_v25 = vmax.f32 %v2002_v19, 0.0  ;;  %v2194_v26 = vmax.f32 %v2066_v20, 0.0  ;;  %v2003_v27 = vadd.f32 %v4296_v60, %v1868_v21 }
 0x1c0   : > { %v2067_v28 = vadd.f32 %v4296_v60, %v1932_v22 }
 0x1c1   : > { %v3367_v29 = vpack.c.bf16 %v2130_v25, %v2130_v25  ;;  %v3431_v30 = vpack.c.bf16 %v2194_v26, %v2194_v26  ;;  %v2131_v31 = vmax.f32 %v2003_v27, 0.0 }
 0x1c2   : > { %v2195_v32 = vmax.f32 %v2067_v28, 0.0  ;;  %v1495_v33 = vpop.f32.mrb[96].mxu0  ;;  %v1751_v34 = vpop.f32.mrb[96].mxu1 }
 0x1c3   : > { %2771 = vst.msk [vmem:[%s3998_s28 + $0xb8] sm:$0xf] %vm2724_vm3, %v3367_v29  ;;  %2835 = vst.msk [vmem:[%s3998_s28 + $0x1b8] sm:$0xf] %vm2724_vm3, %v3431_v30  ;;  %v3368_v35 = vpack.c.bf16 %v2131_v31, %v2131_v31  ;;  %v1869_v37 = vmul.f32 %v4285_v54, %v1495_v33  ;;  %v1933_v38 = vmul.f32 %v4285_v54, %v1751_v34  ;;  %v1497_v39 = vpop.f32.mrb[97].mxu0  ;;  %v1753_v40 = vpop.f32.mrb[97].mxu1 }
 0x1c4   : > { %v3432_v36 = vpack.c.bf16 %v2195_v32, %v2195_v32  ;;  %v1498_v41 = vpop.f32.mrb[98].mxu0  ;;  %v1754_v42 = vpop.f32.mrb[98].mxu1 }
 0x1c5   : > { %2772 = vst.msk [vmem:[%s3998_s28 + $0xbc] sm:$0xf] %vm2724_vm3, %v3368_v35  ;;  %v2004_v43 = vadd.f32 %v4296_v60, %v1869_v37  ;;  %v2068_v44 = vadd.f32 %v4296_v60, %v1933_v38  ;;  %v1870_v45 = vmul.f32 %v4285_v54, %v1498_v41  ;;  %v1934_v46 = vmul.f32 %v4285_v54, %v1754_v42  ;;  %v1500_v47 = vpop.f32.mrb[99].mxu0  ;;  %v1756_v48 = vpop.f32.mrb[99].mxu1 }
 0x1c6   : > { %2836 = vst.msk [vmem:[%s3998_s28 + $0x1bc] sm:$0xf] %vm2724_vm3, %v3432_v36 }
 0x1c7   : > { %v2132_v49 = vmax.f32 %v2004_v43, 0.0  ;;  %v2196_v50 = vmax.f32 %v2068_v44, 0.0  ;;  %v2005_v51 = vadd.f32 %v4296_v60, %v1870_v45  ;;  %v2069_v52 = vadd.f32 %v4296_v60, %v1934_v46 }
 0x1c9   : > { %v3369_v61 = vpack.c.bf16 %v2132_v49, %v2132_v49  ;;  %v3433_v53 = vpack.c.bf16 %v2196_v50, %v2196_v50  ;;  %v2133_v63 = vmax.f32 %v2005_v51, 0.0  ;;  %v2197_v55 = vmax.f32 %v2069_v52, 0.0 }
 0x1ca   : > { %v1503_v56 = vpop.f32.mrb[100].mxu0  ;;  %v1759_v57 = vpop.f32.mrb[100].mxu1 }
 0x1cb   : > { %2773 = vst.msk [vmem:[%s3998_s28 + $0xc0] sm:$0xf] %vm2724_vm3, %v3369_v61  ;;  %2837 = vst.msk [vmem:[%s3998_s28 + $0x1c0] sm:$0xf] %vm2724_vm3, %v3433_v53  ;;  %v3370_v58 = vpack.c.bf16 %v2133_v63, %v2133_v63  ;;  %v3434_v59 = vpack.c.bf16 %v2197_v55, %v2197_v55  ;;  %v1871_v62 = vmul.f32 %v4285_v54, %v1503_v56  ;;  %v1505_v1 = vpop.f32.mrb[101].mxu0  ;;  %v1761_v2 = vpop.f32.mrb[101].mxu1 }
 0x1cc   : > { %v1935_v0 = vmul.f32 %v4285_v54, %v1759_v57  ;;  %v1506_v3 = vpop.f32.mrb[102].mxu0  ;;  %v1762_v4 = vpop.f32.mrb[102].mxu1 }
 0x1cd   : > { %2774 = vst.msk [vmem:[%s3998_s28 + $0xc4] sm:$0xf] %vm2724_vm3, %v3370_v58  ;;  %2838 = vst.msk [vmem:[%s3998_s28 + $0x1c4] sm:$0xf] %vm2724_vm3, %v3434_v59  ;;  %v2006_v5 = vadd.f32 %v4296_v60, %v1871_v62  ;;  %v1872_v7 = vmul.f32 %v4285_v54, %v1506_v3  ;;  %v1936_v8 = vmul.f32 %v4285_v54, %v1762_v4  ;;  %v1508_v9 = vpop.f32.mrb[103].mxu0  ;;  %v1764_v10 = vpop.f32.mrb[103].mxu1 }
 0x1ce   : > { %v2070_v6 = vadd.f32 %v4296_v60, %v1935_v0 }
 0x1cf   : > { %v2134_v11 = vmax.f32 %v2006_v5, 0.0  ;;  %v2007_v13 = vadd.f32 %v4296_v60, %v1872_v7  ;;  %v2071_v14 = vadd.f32 %v4296_v60, %v1936_v8 }
 0x1d0   : > { %v2198_v12 = vmax.f32 %v2070_v6, 0.0 }
 0x1d1   : > { %v3371_v15 = vpack.c.bf16 %v2134_v11, %v2134_v11  ;;  %v2135_v17 = vmax.f32 %v2007_v13, 0.0  ;;  %v2199_v18 = vmax.f32 %v2071_v14, 0.0 }
 0x1d2   : > { %v3435_v16 = vpack.c.bf16 %v2198_v12, %v2198_v12  ;;  %v1511_v19 = vpop.f32.mrb[104].mxu0  ;;  %v1767_v20 = vpop.f32.mrb[104].mxu1 }
 0x1d3   : > { %2775 = vst.msk [vmem:[%s3998_s28 + $0xc8] sm:$0xf] %vm2724_vm3, %v3371_v15  ;;  %v3372_v21 = vpack.c.bf16 %v2135_v17, %v2135_v17  ;;  %v3436_v22 = vpack.c.bf16 %v2199_v18, %v2199_v18  ;;  %v1873_v23 = vmul.f32 %v4285_v54, %v1511_v19  ;;  %v1937_v24 = vmul.f32 %v4285_v54, %v1767_v20  ;;  %v1513_v25 = vpop.f32.mrb[105].mxu0  ;;  %v1769_v26 = vpop.f32.mrb[105].mxu1 }
 0x1d4   : > { %2839 = vst.msk [vmem:[%s3998_s28 + $0x1c8] sm:$0xf] %vm2724_vm3, %v3435_v16  ;;  %v1514_v27 = vpop.f32.mrb[106].mxu0  ;;  %v1770_v28 = vpop.f32.mrb[106].mxu1 }
 0x1d5   : > { %2776 = vst.msk [vmem:[%s3998_s28 + $0xcc] sm:$0xf] %vm2724_vm3, %v3372_v21  ;;  %2840 = vst.msk [vmem:[%s3998_s28 + $0x1cc] sm:$0xf] %vm2724_vm3, %v3436_v22  ;;  %v2008_v29 = vadd.f32 %v4296_v60, %v1873_v23  ;;  %v2072_v30 = vadd.f32 %v4296_v60, %v1937_v24  ;;  %v1874_v31 = vmul.f32 %v4285_v54, %v1514_v27  ;;  %v1516_v33 = vpop.f32.mrb[107].mxu0  ;;  %v1772_v34 = vpop.f32.mrb[107].mxu1 }
 0x1d6   : > { %v1938_v32 = vmul.f32 %v4285_v54, %v1770_v28 }
 0x1d7   : > { %v2136_v35 = vmax.f32 %v2008_v29, 0.0  ;;  %v2200_v36 = vmax.f32 %v2072_v30, 0.0  ;;  %v2009_v37 = vadd.f32 %v4296_v60, %v1874_v31 }
 0x1d8   : > { %v2073_v38 = vadd.f32 %v4296_v60, %v1938_v32 }
 0x1d9   : > { %v3373_v39 = vpack.c.bf16 %v2136_v35, %v2136_v35  ;;  %v3437_v40 = vpack.c.bf16 %v2200_v36, %v2200_v36  ;;  %v2137_v41 = vmax.f32 %v2009_v37, 0.0 }
 0x1da   : > { %v2201_v42 = vmax.f32 %v2073_v38, 0.0  ;;  %v1519_v43 = vpop.f32.mrb[108].mxu0  ;;  %v1775_v44 = vpop.f32.mrb[108].mxu1 }
 0x1db   : > { %2777 = vst.msk [vmem:[%s3998_s28 + $0xd0] sm:$0xf] %vm2724_vm3, %v3373_v39  ;;  %2841 = vst.msk [vmem:[%s3998_s28 + $0x1d0] sm:$0xf] %vm2724_vm3, %v3437_v40  ;;  %v3374_v45 = vpack.c.bf16 %v2137_v41, %v2137_v41  ;;  %v1875_v47 = vmul.f32 %v4285_v54, %v1519_v43  ;;  %v1939_v48 = vmul.f32 %v4285_v54, %v1775_v44  ;;  %v1521_v49 = vpop.f32.mrb[109].mxu0  ;;  %v1777_v50 = vpop.f32.mrb[109].mxu1 }
 0x1dc   : > { %v3438_v46 = vpack.c.bf16 %v2201_v42, %v2201_v42  ;;  %v1522_v51 = vpop.f32.mrb[110].mxu0  ;;  %v1778_v52 = vpop.f32.mrb[110].mxu1 }
 0x1dd   : > { %2778 = vst.msk [vmem:[%s3998_s28 + $0xd4] sm:$0xf] %vm2724_vm3, %v3374_v45  ;;  %v2010_v61 = vadd.f32 %v4296_v60, %v1875_v47  ;;  %v2074_v53 = vadd.f32 %v4296_v60, %v1939_v48  ;;  %v1876_v63 = vmul.f32 %v4285_v54, %v1522_v51  ;;  %v1940_v55 = vmul.f32 %v4285_v54, %v1778_v52  ;;  %v1524_v56 = vpop.f32.mrb[111].mxu0  ;;  %v1780_v57 = vpop.f32.mrb[111].mxu1 }
 0x1de   : > { %2842 = vst.msk [vmem:[%s3998_s28 + $0x1d4] sm:$0xf] %vm2724_vm3, %v3438_v46 }
 0x1df   : > { %v2138_v58 = vmax.f32 %v2010_v61, 0.0  ;;  %v2202_v59 = vmax.f32 %v2074_v53, 0.0  ;;  %v2011_v62 = vadd.f32 %v4296_v60, %v1876_v63  ;;  %v2075_v0 = vadd.f32 %v4296_v60, %v1940_v55 }
 0x1e1   : > { %v3375_v1 = vpack.c.bf16 %v2138_v58, %v2138_v58  ;;  %v3439_v2 = vpack.c.bf16 %v2202_v59, %v2202_v59  ;;  %v2139_v3 = vmax.f32 %v2011_v62, 0.0  ;;  %v2203_v4 = vmax.f32 %v2075_v0, 0.0 }
 0x1e2   : > { %v1527_v5 = vpop.f32.mrb[112].mxu0  ;;  %v1783_v6 = vpop.f32.mrb[112].mxu1 }
 0x1e3   : > { %2779 = vst.msk [vmem:[%s3998_s28 + $0xd8] sm:$0xf] %vm2724_vm3, %v3375_v1  ;;  %2843 = vst.msk [vmem:[%s3998_s28 + $0x1d8] sm:$0xf] %vm2724_vm3, %v3439_v2  ;;  %v3376_v7 = vpack.c.bf16 %v2139_v3, %v2139_v3  ;;  %v3440_v8 = vpack.c.bf16 %v2203_v4, %v2203_v4  ;;  %v1877_v9 = vmul.f32 %v4285_v54, %v1527_v5  ;;  %v1529_v11 = vpop.f32.mrb[113].mxu0  ;;  %v1785_v12 = vpop.f32.mrb[113].mxu1 }
 0x1e4   : > { %v1941_v10 = vmul.f32 %v4285_v54, %v1783_v6  ;;  %v1530_v13 = vpop.f32.mrb[114].mxu0  ;;  %v1786_v14 = vpop.f32.mrb[114].mxu1 }
 0x1e5   : > { %2780 = vst.msk [vmem:[%s3998_s28 + $0xdc] sm:$0xf] %vm2724_vm3, %v3376_v7  ;;  %2844 = vst.msk [vmem:[%s3998_s28 + $0x1dc] sm:$0xf] %vm2724_vm3, %v3440_v8  ;;  %v2012_v15 = vadd.f32 %v4296_v60, %v1877_v9  ;;  %v1878_v17 = vmul.f32 %v4285_v54, %v1530_v13  ;;  %v1942_v18 = vmul.f32 %v4285_v54, %v1786_v14  ;;  %v1532_v19 = vpop.f32.mrb[115].mxu0  ;;  %v1788_v20 = vpop.f32.mrb[115].mxu1 }
 0x1e6   : > { %v2076_v16 = vadd.f32 %v4296_v60, %v1941_v10 }
 0x1e7   : > { %v2140_v21 = vmax.f32 %v2012_v15, 0.0  ;;  %v2013_v23 = vadd.f32 %v4296_v60, %v1878_v17  ;;  %v2077_v24 = vadd.f32 %v4296_v60, %v1942_v18 }
 0x1e8   : > { %v2204_v22 = vmax.f32 %v2076_v16, 0.0 }
 0x1e9   : > { %v3377_v25 = vpack.c.bf16 %v2140_v21, %v2140_v21  ;;  %v2141_v27 = vmax.f32 %v2013_v23, 0.0  ;;  %v2205_v28 = vmax.f32 %v2077_v24, 0.0 }
 0x1ea   : > { %v3441_v26 = vpack.c.bf16 %v2204_v22, %v2204_v22  ;;  %v1535_v29 = vpop.f32.mrb[116].mxu0  ;;  %v1791_v30 = vpop.f32.mrb[116].mxu1 }
 0x1eb   : > { %2781 = vst.msk [vmem:[%s3998_s28 + $0xe0] sm:$0xf] %vm2724_vm3, %v3377_v25  ;;  %v3378_v31 = vpack.c.bf16 %v2141_v27, %v2141_v27  ;;  %v3442_v32 = vpack.c.bf16 %v2205_v28, %v2205_v28  ;;  %v1879_v33 = vmul.f32 %v4285_v54, %v1535_v29  ;;  %v1943_v34 = vmul.f32 %v4285_v54, %v1791_v30  ;;  %v1537_v35 = vpop.f32.mrb[117].mxu0  ;;  %v1793_v36 = vpop.f32.mrb[117].mxu1 }
 0x1ec   : > { %2845 = vst.msk [vmem:[%s3998_s28 + $0x1e0] sm:$0xf] %vm2724_vm3, %v3441_v26  ;;  %v1538_v37 = vpop.f32.mrb[118].mxu0  ;;  %v1794_v38 = vpop.f32.mrb[118].mxu1 }
 0x1ed   : > { %2782 = vst.msk [vmem:[%s3998_s28 + $0xe4] sm:$0xf] %vm2724_vm3, %v3378_v31  ;;  %2846 = vst.msk [vmem:[%s3998_s28 + $0x1e4] sm:$0xf] %vm2724_vm3, %v3442_v32  ;;  %v2014_v39 = vadd.f32 %v4296_v60, %v1879_v33  ;;  %v2078_v40 = vadd.f32 %v4296_v60, %v1943_v34  ;;  %v1880_v41 = vmul.f32 %v4285_v54, %v1538_v37  ;;  %v1540_v43 = vpop.f32.mrb[119].mxu0  ;;  %v1796_v44 = vpop.f32.mrb[119].mxu1 }
 0x1ee   : > { %v1944_v42 = vmul.f32 %v4285_v54, %v1794_v38 }
 0x1ef   : > { %v2142_v45 = vmax.f32 %v2014_v39, 0.0  ;;  %v2206_v46 = vmax.f32 %v2078_v40, 0.0  ;;  %v2015_v47 = vadd.f32 %v4296_v60, %v1880_v41 }
 0x1f0   : > { %v2079_v48 = vadd.f32 %v4296_v60, %v1944_v42 }
 0x1f1   : > { %v3379_v49 = vpack.c.bf16 %v2142_v45, %v2142_v45  ;;  %v3443_v50 = vpack.c.bf16 %v2206_v46, %v2206_v46  ;;  %v2143_v51 = vmax.f32 %v2015_v47, 0.0 }
 0x1f2   : > { %v2207_v52 = vmax.f32 %v2079_v48, 0.0  ;;  %v1543_v61 = vpop.f32.mrb[120].mxu0  ;;  %v1799_v53 = vpop.f32.mrb[120].mxu1 }
 0x1f3   : > { %2783 = vst.msk [vmem:[%s3998_s28 + $0xe8] sm:$0xf] %vm2724_vm3, %v3379_v49  ;;  %2847 = vst.msk [vmem:[%s3998_s28 + $0x1e8] sm:$0xf] %vm2724_vm3, %v3443_v50  ;;  %v3380_v63 = vpack.c.bf16 %v2143_v51, %v2143_v51  ;;  %v1881_v56 = vmul.f32 %v4285_v54, %v1543_v61  ;;  %v1945_v57 = vmul.f32 %v4285_v54, %v1799_v53  ;;  %v1545_v58 = vpop.f32.mrb[121].mxu0  ;;  %v1801_v59 = vpop.f32.mrb[121].mxu1 }
 0x1f4   : > { %v3444_v55 = vpack.c.bf16 %v2207_v52, %v2207_v52  ;;  %v1546_v62 = vpop.f32.mrb[122].mxu0  ;;  %v1802_v0 = vpop.f32.mrb[122].mxu1 }
 0x1f5   : > { %2784 = vst.msk [vmem:[%s3998_s28 + $0xec] sm:$0xf] %vm2724_vm3, %v3380_v63  ;;  %v2016_v1 = vadd.f32 %v4296_v60, %v1881_v56  ;;  %v2080_v2 = vadd.f32 %v4296_v60, %v1945_v57  ;;  %v1882_v3 = vmul.f32 %v4285_v54, %v1546_v62  ;;  %v1946_v4 = vmul.f32 %v4285_v54, %v1802_v0  ;;  %v1548_v5 = vpop.f32.mrb[123].mxu0  ;;  %v1804_v6 = vpop.f32.mrb[123].mxu1 }
 0x1f6   : > { %2848 = vst.msk [vmem:[%s3998_s28 + $0x1ec] sm:$0xf] %vm2724_vm3, %v3444_v55 }
 0x1f7   : > { %v2144_v7 = vmax.f32 %v2016_v1, 0.0  ;;  %v2208_v8 = vmax.f32 %v2080_v2, 0.0  ;;  %v2017_v9 = vadd.f32 %v4296_v60, %v1882_v3  ;;  %v2081_v10 = vadd.f32 %v4296_v60, %v1946_v4 }
 0x1f9   : > { %v3381_v11 = vpack.c.bf16 %v2144_v7, %v2144_v7  ;;  %v3445_v12 = vpack.c.bf16 %v2208_v8, %v2208_v8  ;;  %v2145_v13 = vmax.f32 %v2017_v9, 0.0  ;;  %v2209_v14 = vmax.f32 %v2081_v10, 0.0 }
 0x1fa   : > { %v1551_v15 = vpop.f32.mrb[124].mxu0  ;;  %v1807_v16 = vpop.f32.mrb[124].mxu1 }
 0x1fb   : > { %2785 = vst.msk [vmem:[%s3998_s28 + $0xf0] sm:$0xf] %vm2724_vm3, %v3381_v11  ;;  %2849 = vst.msk [vmem:[%s3998_s28 + $0x1f0] sm:$0xf] %vm2724_vm3, %v3445_v12  ;;  %v3382_v17 = vpack.c.bf16 %v2145_v13, %v2145_v13  ;;  %v3446_v18 = vpack.c.bf16 %v2209_v14, %v2209_v14  ;;  %v1883_v19 = vmul.f32 %v4285_v54, %v1551_v15  ;;  %v1553_v21 = vpop.f32.mrb[125].mxu0  ;;  %v1809_v22 = vpop.f32.mrb[125].mxu1 }
 0x1fc   : > { %v1947_v20 = vmul.f32 %v4285_v54, %v1807_v16  ;;  %v1554_v23 = vpop.f32.mrb[126].mxu0  ;;  %v1810_v24 = vpop.f32.mrb[126].mxu1 }
 0x1fd   : > { %2786 = vst.msk [vmem:[%s3998_s28 + $0xf4] sm:$0xf] %vm2724_vm3, %v3382_v17  ;;  %2850 = vst.msk [vmem:[%s3998_s28 + $0x1f4] sm:$0xf] %vm2724_vm3, %v3446_v18  ;;  %v2018_v25 = vadd.f32 %v4296_v60, %v1883_v19  ;;  %v1884_v27 = vmul.f32 %v4285_v54, %v1554_v23  ;;  %v1948_v28 = vmul.f32 %v4285_v54, %v1810_v24  ;;  %v1556_v29 = vpop.f32.mrb[127].mxu0  ;;  %v1812_v30 = vpop.f32.mrb[127].mxu1 }
 0x1fe   : > { %v2082_v26 = vadd.f32 %v4296_v60, %v1947_v20 }
 0x1ff   : > { %v2146_v31 = vmax.f32 %v2018_v25, 0.0  ;;  %v2019_v33 = vadd.f32 %v4296_v60, %v1884_v27  ;;  %v2083_v34 = vadd.f32 %v4296_v60, %v1948_v28 }
 0x200   : > { %v2210_v32 = vmax.f32 %v2082_v26, 0.0 }
 0x201   : > { %v3383_v35 = vpack.c.bf16 %v2146_v31, %v2146_v31  ;;  %v2147_v37 = vmax.f32 %v2019_v33, 0.0  ;;  %v2211_v38 = vmax.f32 %v2083_v34, 0.0 }
 0x202   : > { %v3447_v36 = vpack.c.bf16 %v2210_v32, %v2210_v32 }
 0x203   : > { %2787 = vst.msk [vmem:[%s3998_s28 + $0xf8] sm:$0xf] %vm2724_vm3, %v3383_v35  ;;  %v3384_v39 = vpack.c.bf16 %v2147_v37, %v2147_v37  ;;  %v3448_v40 = vpack.c.bf16 %v2211_v38, %v2211_v38 }
 0x204   : > { %2851 = vst.msk [vmem:[%s3998_s28 + $0x1f8] sm:$0xf] %vm2724_vm3, %v3447_v36 }
 0x205   : > { %2788 = vst.msk [vmem:[%s3998_s28 + $0xfc] sm:$0xf] %vm2724_vm3, %v3384_v39  ;;  %2852 = vst.msk [vmem:[%s3998_s28 + $0x1fc] sm:$0xf] %vm2724_vm3, %v3448_v40 }
 0x206 PF: > { %s14_s17 = sadd.s32 1, %s3721_s17   ;;  %s4550_s15 = smov %s3717_s16 }
 0x207   : > { %p11_p5 = scmp.ge.s32.totalorder %s14_s17, 4   ;;  %s4551_s16 = smov %s4553_s18 }
 0x209   :  { %13 = sbr.rel (!%p11_p5) target bundleno = 2 (0x2), region = 75 }

</bundles_post_ra>
